<compile_context>
chip_gen: v5e
topology: v5e:2x2
jax: 0.10.0
libtpu: 0.0.40
codegen_flags: <defaults>
</compile_context>

<pallas_src>
import functools

import jax
import jax.numpy as jnp
from jax.experimental import pallas as pl
from jax.experimental.pallas import tpu as pltpu


def _dwconv_kernel(x_ref, w_ref, b_ref, o_ref, acc_ref, *, H, W):
    # x_ref/o_ref: (BT, H, W, TC);  w_ref: (3, 3, TC);  b_ref: (1, TC)
    # acc_ref: (BT, H, W, TC) f32 scratch accumulator.
    x = x_ref[...]                                  # input dtype, no full-tile upcast
    w = w_ref[...].astype(x.dtype)                  # (3, 3, TC)
    b = b_ref[0].astype(jnp.float32)                # (TC,)

    # Width (sublane-axis) shifts: XLU roll + one boundary-column mask each.
    # x_wm[.., w, :] = x[.., w-1, :]  (zero at w==0)
    # x_wp[.., w, :] = x[.., w+1, :]  (zero at w==W-1)
    col = jax.lax.broadcasted_iota(jnp.int32, (1, 1, W, 1), 2)
    zero = jnp.zeros((), x.dtype)
    x_wm = jnp.where(col == 0, zero, pltpu.roll(x, shift=1, axis=2))
    x_wp = jnp.where(col == W - 1, zero, pltpu.roll(x, shift=W - 1, axis=2))

    def row_mac(kr, rows):
        # Kernel row `kr` evaluated at input rows `rows`; multiplies run in the
        # input dtype, the row partial is accumulated in f32.
        part = (x_wm[:, rows] * w[kr, 0]
                + x[:, rows] * w[kr, 1]
                + x_wp[:, rows] * w[kr, 2])
        return part.astype(jnp.float32)

    # Centre kernel row + bias initializes the accumulator (no zeros init,
    # no epilogue bias add).
    acc_ref[...] = row_mac(1, slice(None)) + b
    if H > 1:
        # Kernel row 0 reads input row h-1 -> contributes to output rows 1..H-1.
        acc_ref[:, 1:] += row_mac(0, slice(0, H - 1))
        # Kernel row 2 reads input row h+1 -> contributes to output rows 0..H-2.
        acc_ref[:, :H - 1] += row_mac(2, slice(1, H))

    o_ref[...] = acc_ref[...].astype(o_ref.dtype)


def _vmem_capacity_bytes():
    try:
        cap = getattr(pltpu.get_tpu_info(), "vmem_capacity_bytes", None)
        if cap:
            return int(cap)
    except Exception:
        pass
    return 64 * 1024 * 1024  # conservative fallback (v7x-sized)


def _pick_tiles(B, H, W, Cp, itemsize, budget):
    """Pick (batch tile, channel tile): lane-dense channel tile dividing Cp and the
    largest block that fits the VMEM budget; guarantee >=2 parallel grid steps when
    splittable (megacore)."""
    # Per block-element footprint: double-buffered in+out blocks, f32 scratch acc,
    # and the in-dtype temporaries (x_wm/x_wp/row partial).
    bytes_per_elem = 7 * itemsize + 12

    def fits(bt, tc):
        return bt * H * W * tc * bytes_per_elem <= budget

    tc_cands = [t for t in (Cp, 1024, 768, 512, 384, 256, 128)
                if t <= Cp and Cp % t == 0 and (t % 128 == 0 or t == Cp)]
    seen = set()
    tc_cands = [t for t in tc_cands if not (t in seen or seen.add(t))]
    bt_cands = [d for d in range(B, 0, -1) if B % d == 0]

    for tc in tc_cands:
        for bt in bt_cands:
            if fits(bt, tc):
                if (Cp // tc) * (B // bt) == 1:
                    # Single-step grid: split so both TCs on a megacore get work.
                    if tc > 128 and Cp % (tc // 2) == 0 and (tc // 2) % 128 == 0:
                        tc //= 2
                    elif bt > 1:
                        bt = max(d for d in range(1, bt) if B % d == 0)
                return bt, tc
    # TODO(synk): add spatial (H) tiling with 1-row halos for H*W too large to fit
    # even a single 128-channel tile in VMEM.
    return 1, tc_cands[-1]


def dwconv_pallas(x, weight, bias, H, W):
    """x: (B, N, C) with N == H*W; weight: (C, 1, 3, 3) (PyTorch layout); bias: (C,)."""
    B, N, C = x.shape
    assert N == H * W

    # Pad channels to a lane-dense multiple of 128 (keeps all stores unmasked).
    Cp = max(128, ((C + 127) // 128) * 128)
    if Cp != C:
        x = jnp.pad(x, ((0, 0), (0, 0), (0, Cp - C)))
        weight = jnp.pad(weight, ((0, Cp - C), (0, 0), (0, 0), (0, 0)))
        bias = jnp.pad(bias, ((0, Cp - C),))

    # Layout glue (contiguous reshapes / small transposes; no host-side spatial pad).
    x_nhwc = x.reshape(B, H, W, Cp)
    w_hwc = jnp.transpose(weight[:, 0, :, :], (1, 2, 0))  # (3, 3, Cp)
    b_2d = bias.reshape(1, Cp)

    cap = _vmem_capacity_bytes()
    vmem_limit = min(cap * 3 // 4, 96 * 1024 * 1024)       # ~48 MiB on v7x, 96 MiB on v5e/v6e
    BT, TC = _pick_tiles(B, H, W, Cp, x.dtype.itemsize, int(vmem_limit * 0.8))

    kernel = functools.partial(_dwconv_kernel, H=H, W=W)

    out_nhwc = pl.pallas_call(
        kernel,
        out_shape=jax.ShapeDtypeStruct((B, H, W, Cp), x.dtype),
        grid_spec=pltpu.PrefetchScalarGridSpec(
            num_scalar_prefetch=0,
            # Channel tiles outer, batch inner: weight/bias blocks stay resident
            # across consecutive steps.  Depthwise conv => no halo on either axis.
            grid=(Cp // TC, B // BT),
            in_specs=[
                pl.BlockSpec((BT, H, W, TC), lambda c, b: (b, 0, 0, c)),
                pl.BlockSpec((3, 3, TC), lambda c, b: (0, 0, c)),
                pl.BlockSpec((1, TC), lambda c, b: (0, c)),
            ],
            out_specs=pl.BlockSpec((BT, H, W, TC), lambda c, b: (b, 0, 0, c)),
            scratch_shapes=[pltpu.VMEM((BT, H, W, TC), jnp.float32)],
        ),
        compiler_params=pltpu.CompilerParams(
            dimension_semantics=("parallel", "parallel"),
            vmem_limit_bytes=vmem_limit,
        ),
    )(x_nhwc, w_hwc, b_2d)

    out = out_nhwc.reshape(B, N, Cp)
    if Cp != C:
        out = out[:, :, :C]
    return out


def _reference_dwconv(x, weight, bias, H, W):
    """Pure-JAX reference matching PyTorch nn.Conv2d(C, C, 3, 1, 1, groups=C)."""
    B, N, C = x.shape
    x_nchw = jnp.transpose(x, (0, 2, 1)).reshape(B, C, H, W)
    out = jax.lax.conv_general_dilated(
        x_nchw.astype(jnp.float32),
        weight.astype(jnp.float32),  # (C, 1, 3, 3) = (out, in/groups, kh, kw)
        window_strides=(1, 1),
        padding=((1, 1), (1, 1)),
        dimension_numbers=("NCHW", "OIHW", "NCHW"),
        feature_group_count=C,
        precision=jax.lax.Precision.HIGHEST,
    ) + bias.reshape(1, C, 1, 1)
    return out.reshape(B, C, N).transpose(0, 2, 1).astype(x.dtype)


if __name__ == "__main__":
    key = jax.random.PRNGKey(0)
    # C = 768 (the module's default dim): lane-dense and exercises the channel-tile
    # grid axis.  Spatial kept small.
    B, H, W, C = 2, 8, 8, 768
    N = H * W

    kx, kw, kb = jax.random.split(key, 3)
    x = jax.random.normal(kx, (B, N, C), dtype=jnp.float32)
    weight = jax.random.normal(kw, (C, 1, 3, 3), dtype=jnp.float32) * 0.1
    bias = jax.random.normal(kb, (C,), dtype=jnp.float32) * 0.1

    out = jax.block_until_ready(dwconv_pallas(x, weight, bias, H, W))
    ref = _reference_dwconv(x, weight, bias, H, W)

    assert out.shape == (B, N, C)
    assert jnp.allclose(out, ref, atol=1e-4, rtol=1e-4), float(
        jnp.max(jnp.abs(out - ref)))

    print("KERNEL_OK")
</pallas_src>

<mosaic_0001>
module attributes {stable_mosaic.version = 11 : i64} {
  func.func @_dwconv_kernel(%arg0: i32, %arg1: i32, %arg2: memref<2x8x8x384xf32, #tpu.memory_space<vmem>>, %arg3: memref<3x3x384xf32, #tpu.memory_space<vmem>>, %arg4: memref<1x384xf32, #tpu.memory_space<vmem>>, %arg5: memref<2x8x8x384xf32, #tpu.memory_space<vmem>>, %arg6: memref<2x8x8x384xf32, #tpu.memory_space<vmem>>) attributes {dimension_semantics = [#tpu.dimension_semantics<parallel>, #tpu.dimension_semantics<parallel>], iteration_bounds = array<i64: 2, 1>, scalar_prefetch = 0 : i64, scratch_operands = 1 : i64, tpu.core_type = #tpu.core_type<tc>, window_params = [{transform_indices = @transform_0, window_bounds = array<i64: 2, 8, 8, 384>}, {transform_indices = @transform_1, window_bounds = array<i64: 3, 3, 384>}, {transform_indices = @transform_2, window_bounds = array<i64: 1, 384>}, {transform_indices = @transform_3, window_bounds = array<i64: 2, 8, 8, 384>}]} {
    %c0 = arith.constant 0 : index
    %c0_0 = arith.constant 0 : index
    %c0_1 = arith.constant 0 : index
    %c0_2 = arith.constant 0 : index
    %0 = vector.load %arg2[%c0, %c0_0, %c0_1, %c0_2] : memref<2x8x8x384xf32, #tpu.memory_space<vmem>>, vector<2x8x8x384xf32>
    %c0_3 = arith.constant 0 : index
    %c0_4 = arith.constant 0 : index
    %c0_5 = arith.constant 0 : index
    %1 = vector.load %arg3[%c0_3, %c0_4, %c0_5] : memref<3x3x384xf32, #tpu.memory_space<vmem>>, vector<3x3x384xf32>
    %c0_6 = arith.constant 0 : index
    %c0_7 = arith.constant 0 : index
    %2 = vector.load %arg4[%c0_6, %c0_7] : memref<1x384xf32, #tpu.memory_space<vmem>>, vector<1x384xf32>
    %3 = vector.shape_cast %2 : vector<1x384xf32> to vector<384xf32>
    %4 = tpu.iota {dimensions = array<i32: 2>} : vector<1x1x8x1xi32>
    %c0_i32 = arith.constant 0 : i32
    %5 = vector.broadcast %c0_i32 : i32 to vector<1x1x8x1xi32>
    %6 = arith.cmpi eq, %4, %5 : vector<1x1x8x1xi32>
    %c1_i32 = arith.constant 1 : i32
    %7 = tpu.dynamic_rotate %0 by %c1_i32 dim 2 : vector<2x8x8x384xf32>, i32 -> vector<2x8x8x384xf32>
    %cst = arith.constant 0.000000e+00 : f32
    %8 = vector.shape_cast %6 : vector<1x1x8x1xi1> to vector<1x1x8x1xi1>
    %9 = vector.broadcast %8 : vector<1x1x8x1xi1> to vector<2x8x8x384xi1>
    %10 = vector.broadcast %cst : f32 to vector<2x8x8x384xf32>
    %11 = arith.select %9, %10, %7 : vector<2x8x8x384xi1>, vector<2x8x8x384xf32>
    %c7_i32 = arith.constant 7 : i32
    %12 = vector.broadcast %c7_i32 : i32 to vector<1x1x8x1xi32>
    %13 = arith.cmpi eq, %4, %12 : vector<1x1x8x1xi32>
    %c7_i32_8 = arith.constant 7 : i32
    %14 = tpu.dynamic_rotate %0 by %c7_i32_8 dim 2 : vector<2x8x8x384xf32>, i32 -> vector<2x8x8x384xf32>
    %cst_9 = arith.constant 0.000000e+00 : f32
    %15 = vector.shape_cast %13 : vector<1x1x8x1xi1> to vector<1x1x8x1xi1>
    %16 = vector.broadcast %15 : vector<1x1x8x1xi1> to vector<2x8x8x384xi1>
    %17 = vector.broadcast %cst_9 : f32 to vector<2x8x8x384xf32>
    %18 = arith.select %16, %17, %14 : vector<2x8x8x384xi1>, vector<2x8x8x384xf32>
    %19 = vector.extract_strided_slice %1 {offsets = [1, 0, 0], sizes = [1, 1, 384], strides = [1, 1, 1]} : vector<3x3x384xf32> to vector<1x1x384xf32>
    %20 = vector.shape_cast %19 : vector<1x1x384xf32> to vector<384xf32>
    %21 = vector.shape_cast %20 : vector<384xf32> to vector<1x1x1x384xf32>
    %22 = vector.broadcast %21 : vector<1x1x1x384xf32> to vector<2x8x8x384xf32>
    %23 = arith.mulf %11, %22 : vector<2x8x8x384xf32>
    %24 = vector.extract_strided_slice %1 {offsets = [1, 1, 0], sizes = [1, 1, 384], strides = [1, 1, 1]} : vector<3x3x384xf32> to vector<1x1x384xf32>
    %25 = vector.shape_cast %24 : vector<1x1x384xf32> to vector<384xf32>
    %26 = vector.shape_cast %25 : vector<384xf32> to vector<1x1x1x384xf32>
    %27 = vector.broadcast %26 : vector<1x1x1x384xf32> to vector<2x8x8x384xf32>
    %28 = arith.mulf %0, %27 : vector<2x8x8x384xf32>
    %29 = arith.addf %23, %28 : vector<2x8x8x384xf32>
    %30 = vector.extract_strided_slice %1 {offsets = [1, 2, 0], sizes = [1, 1, 384], strides = [1, 1, 1]} : vector<3x3x384xf32> to vector<1x1x384xf32>
    %31 = vector.shape_cast %30 : vector<1x1x384xf32> to vector<384xf32>
    %32 = vector.shape_cast %31 : vector<384xf32> to vector<1x1x1x384xf32>
    %33 = vector.broadcast %32 : vector<1x1x1x384xf32> to vector<2x8x8x384xf32>
    %34 = arith.mulf %18, %33 : vector<2x8x8x384xf32>
    %35 = arith.addf %29, %34 : vector<2x8x8x384xf32>
    %36 = vector.shape_cast %3 : vector<384xf32> to vector<1x1x1x384xf32>
    %37 = vector.broadcast %36 : vector<1x1x1x384xf32> to vector<2x8x8x384xf32>
    %38 = arith.addf %35, %37 : vector<2x8x8x384xf32>
    %c0_10 = arith.constant 0 : index
    %c0_11 = arith.constant 0 : index
    %c0_12 = arith.constant 0 : index
    %c0_13 = arith.constant 0 : index
    %39 = vector.load %arg6[%c0_10, %c0_11, %c0_12, %c0_13] : memref<2x8x8x384xf32, #tpu.memory_space<vmem>>, vector<2x8x8x384xf32>
    tpu.vector_store %arg6[%c0_10, %c0_11, %c0_12, %c0_13], %38 {strides = array<i32>} : memref<2x8x8x384xf32, #tpu.memory_space<vmem>>, vector<2x8x8x384xf32>,
    %c0_14 = arith.constant 0 : index
    %c1 = arith.constant 1 : index
    %c0_15 = arith.constant 0 : index
    %c0_16 = arith.constant 0 : index
    %40 = vector.load %arg6[%c0_14, %c1, %c0_15, %c0_16] : memref<2x8x8x384xf32, #tpu.memory_space<vmem>>, vector<2x7x8x384xf32>
    %41 = vector.extract_strided_slice %11 {offsets = [0, 0, 0, 0], sizes = [2, 7, 8, 384], strides = [1, 1, 1, 1]} : vector<2x8x8x384xf32> to vector<2x7x8x384xf32>
    %42 = vector.extract_strided_slice %1 {offsets = [0, 0, 0], sizes = [1, 1, 384], strides = [1, 1, 1]} : vector<3x3x384xf32> to vector<1x1x384xf32>
    %43 = vector.shape_cast %42 : vector<1x1x384xf32> to vector<384xf32>
    %44 = vector.shape_cast %43 : vector<384xf32> to vector<1x1x1x384xf32>
    %45 = vector.broadcast %44 : vector<1x1x1x384xf32> to vector<2x7x8x384xf32>
    %46 = arith.mulf %41, %45 : vector<2x7x8x384xf32>
    %47 = vector.extract_strided_slice %0 {offsets = [0, 0, 0, 0], sizes = [2, 7, 8, 384], strides = [1, 1, 1, 1]} : vector<2x8x8x384xf32> to vector<2x7x8x384xf32>
    %48 = vector.extract_strided_slice %1 {offsets = [0, 1, 0], sizes = [1, 1, 384], strides = [1, 1, 1]} : vector<3x3x384xf32> to vector<1x1x384xf32>
    %49 = vector.shape_cast %48 : vector<1x1x384xf32> to vector<384xf32>
    %50 = vector.shape_cast %49 : vector<384xf32> to vector<1x1x1x384xf32>
    %51 = vector.broadcast %50 : vector<1x1x1x384xf32> to vector<2x7x8x384xf32>
    %52 = arith.mulf %47, %51 : vector<2x7x8x384xf32>
    %53 = arith.addf %46, %52 : vector<2x7x8x384xf32>
    %54 = vector.extract_strided_slice %18 {offsets = [0, 0, 0, 0], sizes = [2, 7, 8, 384], strides = [1, 1, 1, 1]} : vector<2x8x8x384xf32> to vector<2x7x8x384xf32>
    %55 = vector.extract_strided_slice %1 {offsets = [0, 2, 0], sizes = [1, 1, 384], strides = [1, 1, 1]} : vector<3x3x384xf32> to vector<1x1x384xf32>
    %56 = vector.shape_cast %55 : vector<1x1x384xf32> to vector<384xf32>
    %57 = vector.shape_cast %56 : vector<384xf32> to vector<1x1x1x384xf32>
    %58 = vector.broadcast %57 : vector<1x1x1x384xf32> to vector<2x7x8x384xf32>
    %59 = arith.mulf %54, %58 : vector<2x7x8x384xf32>
    %60 = arith.addf %53, %59 : vector<2x7x8x384xf32>
    %61 = arith.addf %40, %60 : vector<2x7x8x384xf32>
    %c0_17 = arith.constant 0 : index
    %c1_18 = arith.constant 1 : index
    %c0_19 = arith.constant 0 : index
    %c0_20 = arith.constant 0 : index
    %62 = vector.load %arg6[%c0_17, %c1_18, %c0_19, %c0_20] : memref<2x8x8x384xf32, #tpu.memory_space<vmem>>, vector<2x7x8x384xf32>
    tpu.vector_store %arg6[%c0_17, %c1_18, %c0_19, %c0_20], %61 {strides = array<i32>} : memref<2x8x8x384xf32, #tpu.memory_space<vmem>>, vector<2x7x8x384xf32>,
    %c0_21 = arith.constant 0 : index
    %c0_22 = arith.constant 0 : index
    %c0_23 = arith.constant 0 : index
    %c0_24 = arith.constant 0 : index
    %63 = vector.load %arg6[%c0_21, %c0_22, %c0_23, %c0_24] : memref<2x8x8x384xf32, #tpu.memory_space<vmem>>, vector<2x7x8x384xf32>
    %64 = vector.extract_strided_slice %11 {offsets = [0, 1, 0, 0], sizes = [2, 7, 8, 384], strides = [1, 1, 1, 1]} : vector<2x8x8x384xf32> to vector<2x7x8x384xf32>
    %65 = vector.extract_strided_slice %1 {offsets = [2, 0, 0], sizes = [1, 1, 384], strides = [1, 1, 1]} : vector<3x3x384xf32> to vector<1x1x384xf32>
    %66 = vector.shape_cast %65 : vector<1x1x384xf32> to vector<384xf32>
    %67 = vector.shape_cast %66 : vector<384xf32> to vector<1x1x1x384xf32>
    %68 = vector.broadcast %67 : vector<1x1x1x384xf32> to vector<2x7x8x384xf32>
    %69 = arith.mulf %64, %68 : vector<2x7x8x384xf32>
    %70 = vector.extract_strided_slice %0 {offsets = [0, 1, 0, 0], sizes = [2, 7, 8, 384], strides = [1, 1, 1, 1]} : vector<2x8x8x384xf32> to vector<2x7x8x384xf32>
    %71 = vector.extract_strided_slice %1 {offsets = [2, 1, 0], sizes = [1, 1, 384], strides = [1, 1, 1]} : vector<3x3x384xf32> to vector<1x1x384xf32>
    %72 = vector.shape_cast %71 : vector<1x1x384xf32> to vector<384xf32>
    %73 = vector.shape_cast %72 : vector<384xf32> to vector<1x1x1x384xf32>
    %74 = vector.broadcast %73 : vector<1x1x1x384xf32> to vector<2x7x8x384xf32>
    %75 = arith.mulf %70, %74 : vector<2x7x8x384xf32>
    %76 = arith.addf %69, %75 : vector<2x7x8x384xf32>
    %77 = vector.extract_strided_slice %18 {offsets = [0, 1, 0, 0], sizes = [2, 7, 8, 384], strides = [1, 1, 1, 1]} : vector<2x8x8x384xf32> to vector<2x7x8x384xf32>
    %78 = vector.extract_strided_slice %1 {offsets = [2, 2, 0], sizes = [1, 1, 384], strides = [1, 1, 1]} : vector<3x3x384xf32> to vector<1x1x384xf32>
    %79 = vector.shape_cast %78 : vector<1x1x384xf32> to vector<384xf32>
    %80 = vector.shape_cast %79 : vector<384xf32> to vector<1x1x1x384xf32>
    %81 = vector.broadcast %80 : vector<1x1x1x384xf32> to vector<2x7x8x384xf32>
    %82 = arith.mulf %77, %81 : vector<2x7x8x384xf32>
    %83 = arith.addf %76, %82 : vector<2x7x8x384xf32>
    %84 = arith.addf %63, %83 : vector<2x7x8x384xf32>
    %c0_25 = arith.constant 0 : index
    %c0_26 = arith.constant 0 : index
    %c0_27 = arith.constant 0 : index
    %c0_28 = arith.constant 0 : index
    %85 = vector.load %arg6[%c0_25, %c0_26, %c0_27, %c0_28] : memref<2x8x8x384xf32, #tpu.memory_space<vmem>>, vector<2x7x8x384xf32>
    tpu.vector_store %arg6[%c0_25, %c0_26, %c0_27, %c0_28], %84 {strides = array<i32>} : memref<2x8x8x384xf32, #tpu.memory_space<vmem>>, vector<2x7x8x384xf32>,
    %c0_29 = arith.constant 0 : index
    %c0_30 = arith.constant 0 : index
    %c0_31 = arith.constant 0 : index
    %c0_32 = arith.constant 0 : index
    %86 = vector.load %arg6[%c0_29, %c0_30, %c0_31, %c0_32] : memref<2x8x8x384xf32, #tpu.memory_space<vmem>>, vector<2x8x8x384xf32>
    %c0_33 = arith.constant 0 : index
    %c0_34 = arith.constant 0 : index
    %c0_35 = arith.constant 0 : index
    %c0_36 = arith.constant 0 : index
    %87 = vector.load %arg5[%c0_33, %c0_34, %c0_35, %c0_36] : memref<2x8x8x384xf32, #tpu.memory_space<vmem>>, vector<2x8x8x384xf32>
    tpu.vector_store %arg5[%c0_33, %c0_34, %c0_35, %c0_36], %86 {strides = array<i32>} : memref<2x8x8x384xf32, #tpu.memory_space<vmem>>, vector<2x8x8x384xf32>,
    return
  }
  func.func @transform_0(%arg0: i32, %arg1: i32) -> (i32, i32, i32, i32) {
    %c0_i32 = arith.constant 0 : i32
    %c0_i32_0 = arith.constant 0 : i32
    %c0_i32_1 = arith.constant 0 : i32
    return %arg1, %c0_i32, %c0_i32_0, %arg0 : i32, i32, i32, i32
  }
  func.func @transform_1(%arg0: i32, %arg1: i32) -> (i32, i32, i32) {
    %c0_i32 = arith.constant 0 : i32
    %c0_i32_0 = arith.constant 0 : i32
    %c0_i32_1 = arith.constant 0 : i32
    return %c0_i32, %c0_i32_0, %arg0 : i32, i32, i32
  }
  func.func @transform_2(%arg0: i32, %arg1: i32) -> (i32, i32) {
    %c0_i32 = arith.constant 0 : i32
    %c0_i32_0 = arith.constant 0 : i32
    return %c0_i32, %arg0 : i32, i32
  }
  func.func @transform_3(%arg0: i32, %arg1: i32) -> (i32, i32, i32, i32) {
    %c0_i32 = arith.constant 0 : i32
    %c0_i32_0 = arith.constant 0 : i32
    %c0_i32_1 = arith.constant 0 : i32
    return %arg1, %c0_i32, %c0_i32_0, %arg0 : i32, i32, i32, i32
  }
}

</mosaic_0001>

<bundles_post_ra>
// kernel: tpu_custom_call.1
= control target key start
LH: loop header
LB: loop body
LE: loop exit
PB: predicated region body
PF: predicated region fallthrough
CT: control target
= control target key end

     0   :  { %s3916_s0 = inlined_call_operand.hbm [shape: f32[2,8,8,768], index: 0, kind: input, shape index: {}]   ;;  %s3917_s1 = inlined_call_operand.hbm [shape: f32[3,3,768], index: 1, kind: input, shape index: {}]   ;;  %s3918_s2 = inlined_call_operand.hbm [shape: f32[1,768], index: 2, kind: input, shape index: {}]   ;;  %s3919_s3 = inlined_call_operand.hbm [shape: f32[2,8,8,768], index: 3, kind: output, shape index: {}]  }
   0x1   :  { %3982 = sst [smem:[#allocation37_spill]] %s3917_s1 }
   0x2   :  { %8 = vsyncpa [#allocation4], 0 }
   0x3   :  { %10 = vsyncpa [#allocation4 + $0x1], 0 }
   0x4   :  { %11 = vsyncpa [#allocation7], 0 }
   0x5   :  { %13 = vsyncpa [#allocation7 + $0x1], 0 }
   0x6   :  { %14 = vsyncpa [#allocation5], 0 }
   0x7   :  { %16 = vsyncpa [#allocation5 + $0x1], 0  ;;  %s2202_s12 = smov 0   ;;  %s2204_s13 = smov 0  }
   0x8   :  { %s2206_s14 = smov 0   ;;  %s2208_s15 = smov 0  }
   0x9   :  { %s2210_s16 = smov 0   ;;  %s2212_s17 = smov 0  }
   0xa LB: > { %3983 = sst [smem:[#allocation13_spill]] %s2152_s12  ;;  %s2233_s18 = sadd.s32 4294967295, %s2172_s17   ;;  %s2172_s17 = sphi %s2212_s17, %s22_s17   ;;  %s2168_s16 = sphi %s2210_s16, %s4098_s16   ;;  %s2164_s15 = sphi %s2208_s15, %s4097_s15   ;;  %s2160_s14 = sphi %s2206_s14, %s4093_s14   ;;  %s2156_s13 = sphi %s2204_s13, %s4096_s13   ;;  %s2152_s12 = sphi %s2202_s12, %s4095_s12  }
   0xb   : > { %3984 = sst [smem:[#allocation14_spill]] %s2160_s14  ;;  %s1898_s19 = sadd.s32 4294967294, %s2172_s17  }
   0xc   : > { %3985 = sst [smem:[#allocation15_spill]] %s2172_s17  ;;  %s34_s20 = sadd.s32 1, %s2168_s16 }
   0xd   : > { %s43_s21 = sadd.s32 1, %s2160_s14  ;;  %p36_p0 = scmp.ge.s32.totalorder %s34_s20, 2 }
   0xe   : > { %p50_p1 = scmp.ne.s32.totalorder %s2160_s14, %s2156_s13  ;;  %p51_p2 = scmp.eq.s32.totalorder %s2172_s17, 0 }
   0xf   : > { %p56_p3 = scmp.ne.s32.totalorder %s2156_s13, %s2152_s12  ;;  %s4100_s20 = smov (%p36_p0, %s34_s20), 0 }
  0x10   : > { %3986 = sst [smem:[#allocation16_spill]] %s4100_s20  ;;  %p2245_p4 = por %p51_p2, %p50_p1 }
  0x11   : > { %p57_p5 = scmp.eq.s32.totalorder %s2233_s18, 0  ;;  %s39_s23 = ssub.s32 %s2168_s16, %s4100_s20 }
  0x12   : > { %p134_p6 = scmp.eq.s32.totalorder %s2233_s18, 1  ;;  %p41_p7 = scmp.eq.s32.totalorder %s39_s23, 0 }
  0x13   : > { %p2253_p8 = por %p57_p5, %p56_p3  ;;  %p140_p10 = scmp.eq.s32.totalorder %s1898_s19, 1 }
  0x14   : > { %p2257_p9 = por %p134_p6, %p50_p1  ;;  %p1900_p12 = scmp.ge.s32.totalorder %s2172_s17, 2 }
  0x15   : > { %s2262_s26 = scalar_select %p41_p7, %s2160_s14, %s43_s21  }
  0x16   : > { %p2264_p11 = por %p140_p10, %p56_p3  ;;  %p1938_p13 = scmp.lt.s32.totalorder %s2172_s17, 2 }
  0x17   : > { %3990 = sst [smem:[#allocation17_spill]] %s2262_s26  ;;  %s2271_s28 = sand.u32 1, %s2160_s14  }
  0x18   : > { %s3991_s27 = scalar_select %p2264_p11, 1, 0 }
  0x19   : > { %s185_s29 = sand.u32 1, %s2172_s17   ;;  %p2276_p0 = pnand %p1938_p13, %p2245_p4 }
  0x1a   : > { %3992 = sst [smem:[#allocation18_spill]] %s3991_s27  ;;  %s1911_s4 = smul.u32 36, %s2271_s28 }
  0x1b   : > { %s1908_s5 = smul.u32 12, %s2168_s16  ;;  %s3994_s1 = sld [smem:[#allocation37_spill]] }
  0x1c   : > { %s189_s9 = scalar_lea.vmem [#allocation6], %s1911_s4  ;;  %p1903_p1 = scmp.ge.s32.totalorder %s2172_s17, 1 }
  0x1d   : > { %s197_s10 = sshll.u32 %s189_s9, 4  ;;  %s186_s19 = scalar_lea.sflag [#allocation7], %s185_s29  ;;  %s198_s10 = int_to_ptr.vmem [resolvable:$true] %s197_s10 }
  0x1e   : > { %s2174_s21 = smov 384   ;;  %s2175_s22 = smov 192  }
  0x1f   : > { %s2176_s23 = smov 12   ;;  %p224_p2 = scmp.lt.s32.totalorder %s2172_s17, 3 }
  0x20   : > { %s1910_s4 = smul.u32 384, %s2271_s28 }
  0x21   : > { %s194_s8 = scalar_lea.hbm %s3994_s1, %s1908_s5  ;;  %p2289_p3 = pnand %p1903_p1, %p224_p2 }
  0x22   : > { %s195_s11 = sshll.u32 %s194_s8, 4  ;;  %s1907_s5 = smul.u32 24, %s2168_s16  ;;  %s196_s11 = int_to_ptr.hbm [resolvable:$true] %s195_s11 }
  0x23   : > { %1930 = dma.hbm_to_vmem [thread:$0]  (!%p2276_p0), %s196_s11, 576, %s198_s10, %s186_s19, %s2174_s21, %s2175_s22, %s2176_s23  }
  0x24   : > { %s172_s9 = scalar_lea.hbm %s3916_s0, %s1907_s5  ;;  %s164_s29 = scalar_lea.vmem [#allocation3], %s1910_s4 }
  0x25   : > { %s175_s1 = sshll.u32 %s164_s29, 4  ;;  %s173_s20 = sshll.u32 %s172_s9, 4  ;;  %s176_s1 = int_to_ptr.vmem [resolvable:$true] %s175_s1  ;;  %s174_s20 = int_to_ptr.hbm [resolvable:$true] %s173_s20 }
  0x26   : > { %s1912_s26 = smul.u32 3, %s2271_s28  ;;  %s161_s10 = scalar_lea.sflag [#allocation4], %s2271_s28 }
  0x27   : > { %s2177_s11 = smov 768   ;;  %s2178_s22 = smov 24  }
  0x28   : > { %1927 = dma.hbm_to_vmem [thread:$0]  (!%p2276_p0), %s174_s20, 6144, %s176_s1, %s161_s10, %s2177_s11, %s2174_s21, %s2178_s22  }
  0x29   : > { %s212_s23 = smul.u32 3, %s2168_s16  ;;  %s211_s14 = scalar_lea.vmem [#allocation8], %s1912_s26 }
  0x2a   : > { %s219_s17 = sshll.u32 %s211_s14, 4  ;;  %228 = sbr.rel (%p2289_p3) target bundleno = 329 (0x149), region = 32  ;;  %s220_s17 = int_to_ptr.vmem [resolvable:$true] %s219_s17 }
  0x2b   : > { %s215_s7 = scalar_lea.hbm %s3918_s2, %s212_s23 }
  0x2c   : > { %s217_s4 = sshll.u32 %s215_s7, 4  ;;  %s218_s4 = int_to_ptr.hbm [resolvable:$true] %s217_s4 }
  0x2d   : > { %1933 = dma.hbm_to_vmem [thread:$0]  (!%p2276_p0), %s218_s4, 48, %s220_s17, %s186_s19  }
  0x2f   : > { %s2311_s28 = sand.u32 1, %s2156_s13  }
  0x30   : > { %s1913_s1 = smul.u32 384, %s2311_s28  ;;  %s231_s14 = scalar_lea.sflag [#allocation4], %s2311_s28 }
  0x32   : > { %s2317_s12 = scalar_lea.vmem [#allocation3], %s1913_s1 }
  0x33   : > { %2139 = dma.done.wait (%p2253_p8), %s231_s14, 6144  }
  0x34   : > { %2141 = vsyncadd (%p2253_p8), %s231_s14, 4294961152  ;;  %s240_s17 = sand.u32 1, %s2233_s18   ;;  %s1914_s20 = smul.u32 36, %s2311_s28 }
  0x35   : > { %s241_s26 = scalar_lea.sflag [#allocation7], %s240_s17 }
  0x36   : > { %s2325_s27 = scalar_lea.vmem [#allocation6], %s1914_s20 }
  0x37   : > { %2143 = dma.done.wait (%p2253_p8), %s241_s26, 624  }
  0x38   : > { %2145 = vsyncadd (%p2253_p8), %s241_s26, 4294966672  ;;  %v349_v0 = vlaneseq  ;;  %s1915_s30 = smul.u32 3, %s2311_s28  ;;  %v2335_v2 = vld [vmem:[%s2317_s12] sm:$0xff]  ;;  %v2338_v3 = vld [vmem:[%s2317_s12 + $0x18] sm:$0xff]  ;;  %s2458_s24 = scalar_lea.vmem [#allocation9], %s1913_s1 }
  0x39   : > { %v344_v4 = vld [vmem:[%s2325_s27 + $0xc] sm:$0x77]  ;;  %v352_v6 = vrot.slane %v2335_v2, 7  ;;  %v355_v7 = vrot.slane %v2338_v3, 7  ;;  %v346_v8 = vld [vmem:[%s2325_s27 + $0x18] sm:$0x77] }
  0x3a   : > { %v2332_v1 = vshrl.u32 %v349_v0, 7  ;;  %s254_s18 = scalar_lea.vmem [#allocation8], %s1915_s30  ;;  %v451_v9 = vrot.slane %v2335_v2, 1  ;;  %v454_v10 = vrot.slane %v2338_v3, 1  ;;  %v551_v11 = vperm.slane %v344_v4, 0  ;;  %v2362_v17 = vld [vmem:[%s2317_s12 + $0x8] sm:$0xff] }
  0x3b   : > { %v2342_v5 = vld [vmem:[%s254_s18] sm:$0x7]  ;;  %v608_v12 = vperm.slane %v344_v4, 1  ;;  %v713_v15 = vperm.slane %v344_v4, 2  ;;  %v2365_v18 = vld [vmem:[%s2317_s12 + $0x20] sm:$0xff]  ;;  %v1331_v24 = vperm.slane %v346_v8, 0 }
  0x3c   : > { %vm351_vm0 = vcmp.eq.s32.totalorder %v2332_v1, 0  ;;  %vm450_vm1 = vcmp.eq.s32.totalorder %v2332_v1, 7  ;;  %v2359_v16 = vperm.slane %v2342_v5, 0  ;;  %3997 = vst [vmem:[#allocation20_spill] sm:$0xff] %v2365_v18  ;;  %v2375_v21 = vperm.slane %v551_v11, 0  ;;  %v2423_v51 = vld [vmem:[%s2317_s12 + $0x10] sm:$0xff] }
  0x3d   : > { %v2352_v13 = vsel %vm351_vm0, 0.0, %v352_v6  ;;  %v2356_v14 = vsel %vm351_vm0, 0.0, %v355_v7  ;;  %v2369_v19 = vsel %vm450_vm1, 0.0, %v451_v9  ;;  %v2373_v20 = vsel %vm450_vm1, 0.0, %v454_v10  ;;  %v2433_v60 = vld [vmem:[%s2317_s12 + $0x28] sm:$0xff]  ;;  %s1909_s19 = smul.u32 24, %s2164_s15 }
  0x3e   : > { %3996 = vst [vmem:[#allocation19_spill] sm:$0xff] %v2359_v16  ;;  %v2377_v22 = vperm.slane %v608_v12, 1  ;;  %v2379_v23 = vperm.slane %v713_v15, 2  ;;  %v1382_v25 = vperm.slane %v346_v8, 1  ;;  %v1475_v26 = vperm.slane %v346_v8, 2  ;;  %s1764_s5 = sshll.u32 %s2458_s24, 4  ;;  %s1765_s5 = int_to_ptr.vmem [resolvable:$true] %s1764_s5 }
  0x3f   : > { %v560_v27 = vmul.f32 %v2375_v21, %v2352_v13  ;;  %v353_v29 = vrot.slane %v2362_v17, 7  ;;  %v356_v30 = vrot.slane %v2365_v18, 7  ;;  %v2389_v32 = vperm.slane %v1331_v24, 0  ;;  %4002 = vst [vmem:[#allocation25_spill] sm:$0xff] %v2433_v60  ;;  %v345_v9 = vld [vmem:[%s2325_s27 + $0x14] sm:$0x7]  ;;  %s1763_s6 = scalar_lea.hbm %s3919_s3, %s1909_s19 }
  0x40   : > { %v617_v28 = vmul.f32 %v2377_v22, %v2335_v2  ;;  %v722_v31 = vmul.f32 %v2379_v23, %v2369_v19  ;;  %v2391_v33 = vperm.slane %v1382_v25, 1  ;;  %v2393_v34 = vperm.slane %v1475_v26, 2  ;;  %s1766_s8 = sshll.u32 %s1763_s6, 4  ;;  %s1749_s9 = scalar_lea.sflag [#allocation5], %s2311_s28  ;;  %s1767_s8 = int_to_ptr.hbm [resolvable:$true] %s1766_s8 }
  0x41   : > { %3998 = vst [vmem:[#allocation21_spill] sm:$0xff] %v2389_v32  ;;  %v2397_v36 = vsel %vm351_vm0, 0.0, %v353_v29  ;;  %v2401_v37 = vsel %vm351_vm0, 0.0, %v356_v30  ;;  %v452_v38 = vrot.slane %v2362_v17, 1  ;;  %v1340_v39 = vmul.f32 %v2389_v32, %v2356_v14  ;;  %v347_v29 = vld [vmem:[%s2325_s27 + $0x20] sm:$0x7] }
  0x42   : > { %3999 = vst [vmem:[#allocation22_spill] sm:$0xff] %v2391_v33  ;;  %v665_v35 = vadd.f32 %v617_v28, %v560_v27  ;;  %v1391_v40 = vmul.f32 %v2391_v33, %v2338_v3  ;;  %v1484_v41 = vmul.f32 %v2393_v34, %v2373_v20  ;;  %v455_v42 = vrot.slane %v2365_v18, 1  ;;  %s2100_s29 = sshra.s32 %s1767_s8, 4  ;;  %s2106_s23 = scalar_lea.hbm %s3919_s3, 768  ;;  %s2101_s29 = int_to_ptr.hbm [resolvable:$true] %s2100_s29 }
  0x43   : > { %4000 = vst [vmem:[#allocation23_spill] sm:$0xff] %v2393_v34  ;;  %v2413_v44 = vsel %vm450_vm1, 0.0, %v452_v38  ;;  %v552_v45 = vperm.slane %v344_v4, 4  ;;  %v609_v46 = vperm.slane %v344_v4, 5  ;;  %v714_v49 = vperm.slane %v344_v4, 6  ;;  %s2102_s10 = scalar_lea.hbm %s2101_s29, 384  ;;  %p2107_p7 = scmp.lt.s32.totalorder %s2101_s29, %s3919_s3 }
  0x44   : > { %v770_v43 = vadd.f32 %v722_v31, %v665_v35  ;;  %v1433_v47 = vadd.f32 %v1391_v40, %v1340_v39  ;;  %v2417_v48 = vsel %vm450_vm1, 0.0, %v455_v42  ;;  %v2420_v50 = vperm.slane %v2342_v5, 1  ;;  %v2481_v42 = vld [vmem:[%s2317_s12 + $0x30] sm:$0xff]  ;;  %p2103_p4 = scmp.ne.s32.totalorder %s2101_s29, %s2102_s10  ;;  %p2108_p8 = scmp.lt.s32.totalorder %s2106_s23, %s2102_s10 }
  0x45   : > { %4001 = vst [vmem:[#allocation24_spill] sm:$0xff] %v2417_v48  ;;  %v2426_v53 = vperm.slane %v552_v45, 0  ;;  %v2428_v54 = vperm.slane %v609_v46, 1  ;;  %v1332_v55 = vperm.slane %v346_v8, 4  ;;  %v2430_v57 = vperm.slane %v714_v49, 2 }
  0x46   : > { %v825_v52 = vadd.f32 %v2359_v16, %v770_v43  ;;  %v1526_v56 = vadd.f32 %v1484_v41, %v1433_v47  ;;  %v1383_v58 = vperm.slane %v346_v8, 5  ;;  %v1476_v59 = vperm.slane %v346_v8, 6  ;;  %p2104_p5 = pnand %p2103_p4, %p2257_p9  ;;  %p2109_p10 = por %p2108_p8, %p2107_p7 }
  0x47   : > { %v561_v61 = vmul.f32 %v2426_v53, %v2397_v36  ;;  %v618_v62 = vmul.f32 %v2428_v54, %v2362_v17  ;;  %v2439_v63 = vperm.slane %v1332_v55, 0  ;;  %v354_v0 = vrot.slane %v2423_v51, 7 }
  0x48   : > { %v1568_v4 = vadd.f32 %v1526_v56, %v825_v52  ;;  %v723_v6 = vmul.f32 %v2430_v57, %v2413_v44  ;;  %v2444_v7 = vperm.slane %v1383_v58, 1  ;;  %v2446_v8 = vperm.slane %v1476_v59, 2  ;;  %p2105_p6 = pneg %p2104_p5 }
  0x49   : > { %4003 = vst [vmem:[#allocation26_spill] sm:$0xff] %v2439_v63  ;;  %v666_v10 = vadd.f32 %v618_v62, %v561_v61  ;;  %v1341_v11 = vmul.f32 %v2439_v63, %v2401_v37  ;;  %v357_v12 = vrot.slane %v2433_v60, 7  ;;  %v2454_v15 = vsel %vm351_vm0, 0.0, %v354_v0 }
  0x4a   : > { %4004 = vst [vmem:[#allocation27_spill] sm:$0xff] %v2444_v7  ;;  %v1392_v24 = vmul.f32 %v2444_v7, %v2365_v18  ;;  %v1485_v25 = vmul.f32 %v2446_v8, %v2417_v48  ;;  %v453_v26 = vrot.slane %v2423_v51, 1  ;;  %v456_v27 = vrot.slane %v2433_v60, 1  ;;  %p2110_p13 = pnand %p2109_p10, %p2105_p6 }
  0x4b   : > { %4005 = vst [vmem:[#allocation28_spill] sm:$0xff] %v2446_v8  ;;  %v771_v28 = vadd.f32 %v723_v6, %v666_v10  ;;  %v2470_v30 = vsel %vm351_vm0, 0.0, %v357_v12  ;;  %v553_v31 = vperm.slane %v345_v9, 0  ;;  %v610_v35 = vperm.slane %v345_v9, 1 }
  0x4c   : > { %1700 = vst [vmem:[%s2458_s24] sm:$0xff] %v1568_v4  ;;  %v1434_v38 = vadd.f32 %v1392_v24, %v1341_v11  ;;  %v2474_v39 = vsel %vm450_vm1, 0.0, %v453_v26  ;;  %v2478_v40 = vsel %vm450_vm1, 0.0, %v456_v27  ;;  %v715_v41 = vperm.slane %v345_v9, 2  ;;  %v342_v11 = vld [vmem:[%s2325_s27] sm:$0x77] }
  0x4d   : > { %4006 = vst [vmem:[#allocation29_spill] sm:$0xff] %v2478_v40  ;;  %v826_v43 = vadd.f32 %v2420_v50, %v771_v28  ;;  %v2484_v45 = vperm.slane %v553_v31, 0  ;;  %v2486_v46 = vperm.slane %v610_v35, 1  ;;  %v2489_v47 = vperm.slane %v2342_v5, 2 }
  0x4e   : > { %v1527_v49 = vadd.f32 %v1485_v25, %v1434_v38  ;;  %v2491_v52 = vperm.slane %v715_v41, 2  ;;  %v1333_v55 = vperm.slane %v347_v29, 0  ;;  %v1384_v56 = vperm.slane %v347_v29, 1 }
  0x4f   : > { %v562_v58 = vmul.f32 %v2484_v45, %v2454_v15  ;;  %v619_v59 = vmul.f32 %v2486_v46, %v2423_v51  ;;  %v1477_v61 = vperm.slane %v347_v29, 2  ;;  %v358_v62 = vrot.slane %v2481_v42, 7 }
  0x50   : > { %v1569_v0 = vadd.f32 %v1527_v49, %v826_v43  ;;  %v724_v5 = vmul.f32 %v2491_v52, %v2474_v39  ;;  %v2500_v4 = vperm.slane %v1333_v55, 0  ;;  %v2502_v6 = vperm.slane %v1384_v56, 1  ;;  %v2530_v56 = vld [vmem:[%s2317_s12 + $0x38] sm:$0xff] }
  0x51   : > { %v667_v9 = vadd.f32 %v619_v59, %v562_v58  ;;  %v2504_v10 = vperm.slane %v1477_v61, 2  ;;  %v2509_v12 = vsel %vm351_vm0, 0.0, %v358_v62  ;;  %v457_v24 = vrot.slane %v2481_v42, 1 }
  0x52   : > { %4007 = vst [vmem:[#allocation30_spill] sm:$0xff] %v2500_v4  ;;  %v1342_v25 = vmul.f32 %v2500_v4, %v2470_v30  ;;  %v1393_v26 = vmul.f32 %v2502_v6, %v2433_v60  ;;  %v563_v27 = vmul.f32 %v2375_v21, %v2356_v14  ;;  %v620_v28 = vmul.f32 %v2377_v22, %v2338_v3 }
  0x53   : > { %4008 = vst [vmem:[#allocation31_spill] sm:$0xff] %v2502_v6  ;;  %v772_v29 = vadd.f32 %v724_v5, %v667_v9  ;;  %v1486_v31 = vmul.f32 %v2504_v10, %v2478_v40  ;;  %v2525_v35 = vsel %vm450_vm1, 0.0, %v457_v24  ;;  %v725_v38 = vmul.f32 %v2379_v23, %v2373_v20 }
  0x54   : > { %4009 = vst [vmem:[#allocation32_spill] sm:$0xff] %v2504_v10  ;;  %v1435_v41 = vadd.f32 %v1393_v26, %v1342_v25  ;;  %v668_v43 = vadd.f32 %v620_v28, %v563_v27  ;;  %v966_v49 = vperm.slane %v342_v11, 0  ;;  %v1017_v55 = vperm.slane %v342_v11, 1 }
  0x55   : > { %1701 = vst [vmem:[%s2458_s24 + $0x8] sm:$0xff] %v1569_v0  ;;  %v827_v58 = vadd.f32 %v2489_v47, %v772_v29  ;;  %v1110_v59 = vperm.slane %v342_v11, 2  ;;  %v1343_v61 = vmul.f32 %v2389_v32, %v2509_v12  ;;  %v1394_v62 = vmul.f32 %v2391_v33, %v2481_v42 }
  0x56   : > { %4010 = vst [vmem:[#allocation33_spill] sm:$0xff] %v2525_v35  ;;  %v1528_v0 = vadd.f32 %v1486_v31, %v1435_v41  ;;  %v773_v5 = vadd.f32 %v725_v38, %v668_v43  ;;  %v2537_v9 = vperm.slane %v966_v49, 0  ;;  %v2539_v24 = vperm.slane %v1017_v55, 1 }
  0x57   : > { %v2541_v25 = vperm.slane %v1110_v59, 2  ;;  %v1436_v26 = vadd.f32 %v1394_v62, %v1343_v61  ;;  %v1487_v27 = vmul.f32 %v2393_v34, %v2525_v35  ;;  %v359_v28 = vrot.slane %v2530_v56, 7 }
  0x58   : > { %4011 = vst [vmem:[#allocation34_spill] sm:$0xff] %v2539_v24  ;;  %v1570_v29 = vadd.f32 %v1528_v0, %v827_v58  ;;  %v828_v32 = vadd.f32 %v2359_v16, %v773_v5  ;;  %v975_v31 = vmul.f32 %v2537_v9, %v2352_v13  ;;  %v1026_v38 = vmul.f32 %v2539_v24, %v2335_v2  ;;  %v2570_v5 = vld [vmem:[%s2317_s12 + $0x40] sm:$0xff] }
  0x59   : > { %v1119_v41 = vmul.f32 %v2541_v25, %v2369_v19  ;;  %v1529_v43 = vadd.f32 %v1487_v27, %v1436_v26  ;;  %v2555_v49 = vsel %vm351_vm0, 0.0, %v359_v28  ;;  %v458_v55 = vrot.slane %v2530_v56, 1 }
  0x5a   : > { %1702 = vst [vmem:[%s2458_s24 + $0x10] sm:$0xff] %v1570_v29  ;;  %v1068_v58 = vadd.f32 %v1026_v38, %v975_v31  ;;  %v564_v59 = vmul.f32 %v2426_v53, %v2401_v37  ;;  %v621_v13 = vmul.f32 %v2428_v54, %v2365_v18  ;;  %v726_v2 = vmul.f32 %v2430_v57, %v2417_v48 }
  0x5b   : > { %v2567_v19 = vsel %vm450_vm1, 0.0, %v458_v55  ;;  %v967_v61 = vperm.slane %v342_v11, 4  ;;  %v1018_v62 = vperm.slane %v342_v11, 5  ;;  %v1111_v0 = vperm.slane %v342_v11, 6 }
  0x5c   : > { %v1161_v26 = vadd.f32 %v1119_v41, %v1068_v58  ;;  %v669_v27 = vadd.f32 %v621_v13, %v564_v59  ;;  %v1344_v28 = vmul.f32 %v2439_v63, %v2555_v49  ;;  %v1395_v29 = vmul.f32 %v2444_v7, %v2530_v56 }
  0x5d   : > { %v2576_v31 = vperm.slane %v967_v61, 0  ;;  %v2578_v38 = vperm.slane %v1018_v62, 1  ;;  %v2580_v55 = vperm.slane %v1111_v0, 2  ;;  %v1488_v11 = vmul.f32 %v2446_v8, %v2567_v19  ;;  %v343_v62 = vld [vmem:[%s2325_s27 + $0x8] sm:$0x7] }
  0x5e   : > { %v1203_v48 = vadd.f32 %v1161_v26, %v828_v32  ;;  %v774_v18 = vadd.f32 %v726_v2, %v669_v27  ;;  %v1437_v41 = vadd.f32 %v1395_v29, %v1344_v28  ;;  %v360_v58 = vrot.slane %v2570_v5, 7  ;;  %v2610_v29 = vld [vmem:[%s2317_s12 + $0x48] sm:$0xff] }
  0x5f   : > { %v976_v59 = vmul.f32 %v2576_v31, %v2397_v36  ;;  %v1027_v13 = vmul.f32 %v2578_v38, %v2362_v17  ;;  %v1120_v61 = vmul.f32 %v2580_v55, %v2413_v44  ;;  %v459_v0 = vrot.slane %v2570_v5, 1  ;;  %4012 = vst [vmem:[#allocation35_spill] sm:$0xff] %v2610_v29 }
  0x60   : > { %v1571_v8 = vadd.f32 %v1529_v43, %v1203_v48  ;;  %v829_v32 = vadd.f32 %v2420_v50, %v774_v18  ;;  %v1530_v2 = vadd.f32 %v1488_v11, %v1437_v41  ;;  %v2596_v26 = vsel %vm351_vm0, 0.0, %v360_v58 }
  0x61   : > { %v1069_v27 = vadd.f32 %v1027_v13, %v976_v59  ;;  %v2600_v36 = vsel %vm450_vm1, 0.0, %v459_v0  ;;  %v565_v17 = vmul.f32 %v2484_v45, %v2470_v30  ;;  %v622_v44 = vmul.f32 %v2486_v46, %v2433_v60 }
  0x62   : > { %1703 = vst [vmem:[%s2458_s24 + $0x18] sm:$0xff] %v1571_v8  ;;  %v727_v18 = vmul.f32 %v2491_v52, %v2478_v40  ;;  %v968_v48 = vperm.slane %v343_v62, 0  ;;  %v1019_v43 = vperm.slane %v343_v62, 1  ;;  %v1112_v28 = vperm.slane %v343_v62, 2 }
  0x63   : > { %v1162_v11 = vadd.f32 %v1120_v61, %v1069_v27  ;;  %v670_v41 = vadd.f32 %v622_v44, %v565_v17  ;;  %v1345_v58 = vmul.f32 %v2500_v4, %v2596_v26  ;;  %v1396_v59 = vmul.f32 %v2502_v6, %v2570_v5 }
  0x64   : > { %v2616_v13 = vperm.slane %v968_v48, 0  ;;  %v2618_v0 = vperm.slane %v1019_v43, 1  ;;  %v2620_v8 = vperm.slane %v1112_v28, 2  ;;  %v1489_v40 = vmul.f32 %v2504_v10, %v2600_v36 }
  0x65   : > { %v1204_v62 = vadd.f32 %v1162_v11, %v829_v32  ;;  %v775_v60 = vadd.f32 %v727_v18, %v670_v41  ;;  %v1438_v61 = vadd.f32 %v1396_v59, %v1345_v58  ;;  %v361_v27 = vrot.slane %v2610_v29, 7  ;;  %v2646_v58 = vld [vmem:[%s2317_s12 + $0x50] sm:$0xff] }
  0x66   : > { %4013 = vst [vmem:[#allocation36_spill] sm:$0xff] %v2620_v8  ;;  %v977_v17 = vmul.f32 %v2616_v13, %v2454_v15  ;;  %v1028_v44 = vmul.f32 %v2618_v0, %v2423_v51  ;;  %v1121_v48 = vmul.f32 %v2620_v8, %v2474_v39  ;;  %v460_v43 = vrot.slane %v2610_v29, 1 }
  0x67   : > { %v1572_v28 = vadd.f32 %v1530_v2, %v1204_v62  ;;  %v830_v32 = vadd.f32 %v2489_v47, %v775_v60  ;;  %v1531_v11 = vadd.f32 %v1489_v40, %v1438_v61  ;;  %v2635_v18 = vsel %vm351_vm0, 0.0, %v361_v27  ;;  %v4014_v27 = vld [vmem:[#allocation21_spill] sm:$0xff] }
  0x68   : > { %v1070_v41 = vadd.f32 %v1028_v44, %v977_v17  ;;  %v2639_v15 = vsel %vm450_vm1, 0.0, %v460_v43  ;;  %v566_v51 = vmul.f32 %v2375_v21, %v2509_v12  ;;  %v623_v39 = vmul.f32 %v2377_v22, %v2481_v42 }
  0x69   : > { %1704 = vst [vmem:[%s2458_s24 + $0x20] sm:$0xff] %v1572_v28  ;;  %v728_v60 = vmul.f32 %v2379_v23, %v2525_v35  ;;  %v978_v40 = vmul.f32 %v2537_v9, %v2356_v14  ;;  %v1029_v2 = vmul.f32 %v2539_v24, %v2338_v3  ;;  %v1122_v59 = vmul.f32 %v2541_v25, %v2373_v20 }
  0x6a   : > { %v1163_v62 = vadd.f32 %v1121_v48, %v1070_v41  ;;  %v671_v61 = vadd.f32 %v623_v39, %v566_v51  ;;  %v1346_v17 = vmul.f32 %v4014_v27, %v2635_v18  ;;  %v1397_v44 = vmul.f32 %v2391_v33, %v2610_v29 }
  0x6b   : > { %v1071_v43 = vadd.f32 %v1029_v2, %v978_v40  ;;  %v1490_v28 = vmul.f32 %v2393_v34, %v2639_v15  ;;  %v362_v14 = vrot.slane %v2646_v58, 7  ;;  %v461_v3 = vrot.slane %v2646_v58, 1 }
  0x6c   : > { %v1205_v35 = vadd.f32 %v1163_v62, %v830_v32  ;;  %v776_v24 = vadd.f32 %v728_v60, %v671_v61  ;;  %v1439_v20 = vadd.f32 %v1397_v44, %v1346_v17  ;;  %v567_v48 = vmul.f32 %v2426_v53, %v2555_v49  ;;  %v2681_v61 = vld [vmem:[%s2317_s12 + $0x58] sm:$0xff] }
  0x6d   : > { %v1164_v41 = vadd.f32 %v1122_v59, %v1071_v43  ;;  %v2669_v51 = vsel %vm351_vm0, 0.0, %v362_v14  ;;  %v2673_v39 = vsel %vm450_vm1, 0.0, %v461_v3  ;;  %v624_v40 = vmul.f32 %v2428_v54, %v2530_v56  ;;  %v4015_v44 = vld [vmem:[#allocation20_spill] sm:$0xff] }
  0x6e   : > { %v1573_v2 = vadd.f32 %v1531_v11, %v1205_v35  ;;  %v831_v32 = vadd.f32 %v2359_v16, %v776_v24  ;;  %v1532_v60 = vadd.f32 %v1490_v28, %v1439_v20  ;;  %v729_v62 = vmul.f32 %v2430_v57, %v2567_v19  ;;  %v4016_v14 = vld [vmem:[#allocation24_spill] sm:$0xff] }
  0x6f   : > { %v672_v59 = vadd.f32 %v624_v40, %v567_v48  ;;  %v979_v17 = vmul.f32 %v2576_v31, %v2401_v37  ;;  %v1030_v43 = vmul.f32 %v2578_v38, %v4015_v44  ;;  %v1123_v3 = vmul.f32 %v2580_v55, %v4016_v14  ;;  %v4017_v28 = vld [vmem:[#allocation28_spill] sm:$0xff] }
  0x70   : > { %1705 = vst [vmem:[%s2458_s24 + $0x28] sm:$0xff] %v1573_v2  ;;  %v1206_v35 = vadd.f32 %v1164_v41, %v831_v32  ;;  %v1347_v24 = vmul.f32 %v2439_v63, %v2669_v51  ;;  %v1398_v11 = vmul.f32 %v2444_v7, %v2646_v58  ;;  %v1491_v20 = vmul.f32 %v4017_v28, %v2673_v39 }
  0x71   : > { %v777_v37 = vadd.f32 %v729_v62, %v672_v59  ;;  %v1072_v48 = vadd.f32 %v1030_v43, %v979_v17  ;;  %v363_v40 = vrot.slane %v2681_v61, 7  ;;  %v462_v44 = vrot.slane %v2681_v61, 1  ;;  %v2712_v59 = vld [vmem:[%s2317_s12 + $0x60] sm:$0xff] }
  0x72   : > { %v1574_v14 = vadd.f32 %v1532_v60, %v1206_v35  ;;  %v1440_v2 = vadd.f32 %v1398_v11, %v1347_v24  ;;  %v568_v41 = vmul.f32 %v2484_v45, %v2596_v26  ;;  %v625_v32 = vmul.f32 %v2486_v46, %v2570_v5  ;;  %v4018_v24 = vld [vmem:[#allocation25_spill] sm:$0xff] }
  0x73   : > { %v832_v63 = vadd.f32 %v2420_v50, %v777_v37  ;;  %v1165_v7 = vadd.f32 %v1123_v3, %v1072_v48  ;;  %v2705_v28 = vsel %vm351_vm0, 0.0, %v363_v40  ;;  %v2709_v62 = vsel %vm450_vm1, 0.0, %v462_v44  ;;  %v4019_v37 = vld [vmem:[#allocation29_spill] sm:$0xff] }
  0x74   : > { %1706 = vst [vmem:[%s2458_s24 + $0x30] sm:$0xff] %v1574_v14  ;;  %v1533_v60 = vadd.f32 %v1491_v20, %v1440_v2  ;;  %v673_v17 = vadd.f32 %v625_v32, %v568_v41  ;;  %v730_v43 = vmul.f32 %v2491_v52, %v2600_v36  ;;  %v980_v35 = vmul.f32 %v2616_v13, %v2470_v30 }
  0x75   : > { %v1207_v3 = vadd.f32 %v1165_v7, %v832_v63  ;;  %v1031_v11 = vmul.f32 %v2618_v0, %v4018_v24  ;;  %v1124_v48 = vmul.f32 %v2620_v8, %v4019_v37  ;;  %v1348_v40 = vmul.f32 %v2500_v4, %v2705_v28 }
  0x76   : > { %v778_v44 = vadd.f32 %v730_v43, %v673_v17  ;;  %v1399_v20 = vmul.f32 %v2502_v6, %v2681_v61  ;;  %v1492_v14 = vmul.f32 %v2504_v10, %v2709_v62  ;;  %v364_v63 = vrot.slane %v2712_v59, 7 }
  0x77   : > { %v1575_v7 = vadd.f32 %v1533_v60, %v1207_v3  ;;  %v1073_v30 = vadd.f32 %v1031_v11, %v980_v35  ;;  %v463_v2 = vrot.slane %v2712_v59, 1  ;;  %v569_v41 = vmul.f32 %v2375_v21, %v2635_v18  ;;  %v2750_v11 = vld [vmem:[%s2317_s12 + $0x68] sm:$0xff] }
  0x78   : > { %v833_v32 = vadd.f32 %v2489_v47, %v778_v44  ;;  %v1441_v24 = vadd.f32 %v1399_v20, %v1348_v40  ;;  %v2736_v17 = vsel %vm351_vm0, 0.0, %v364_v63  ;;  %v626_v43 = vmul.f32 %v2377_v22, %v2610_v29  ;;  %v4020_v20 = vld [vmem:[#allocation34_spill] sm:$0xff]  ;;  %v4021_v29 = vld [vmem:[#allocation33_spill] sm:$0xff] }
  0x79   : > { %1707 = vst [vmem:[%s2458_s24 + $0x38] sm:$0xff] %v1575_v7  ;;  %v1166_v37 = vadd.f32 %v1124_v48, %v1073_v30  ;;  %v2743_v60 = vsel %vm450_vm1, 0.0, %v463_v2  ;;  %v731_v35 = vmul.f32 %v2379_v23, %v2639_v15  ;;  %v981_v3 = vmul.f32 %v2537_v9, %v2509_v12 }
  0x7a   : > { %v1534_v40 = vadd.f32 %v1492_v14, %v1441_v24  ;;  %v674_v44 = vadd.f32 %v626_v43, %v569_v41  ;;  %v1032_v63 = vmul.f32 %v4020_v20, %v2481_v42  ;;  %v1125_v48 = vmul.f32 %v2541_v25, %v4021_v29 }
  0x7b   : > { %v1208_v7 = vadd.f32 %v1166_v37, %v833_v32  ;;  %v1349_v30 = vmul.f32 %v4014_v27, %v2736_v17  ;;  %v1400_v2 = vmul.f32 %v2391_v33, %v2712_v59  ;;  %v1493_v12 = vmul.f32 %v2393_v34, %v2743_v60 }
  0x7c   : > { %v779_v14 = vadd.f32 %v731_v35, %v674_v44  ;;  %v1074_v41 = vadd.f32 %v1032_v63, %v981_v3  ;;  %v365_v24 = vrot.slane %v2750_v11, 7  ;;  %v464_v42 = vrot.slane %v2750_v11, 1  ;;  %v2778_v3 = vld [vmem:[%s2317_s12 + $0x70] sm:$0xff] }
  0x7d   : > { %v1576_v43 = vadd.f32 %v1534_v40, %v1208_v7  ;;  %v1442_v29 = vadd.f32 %v1400_v2, %v1349_v30  ;;  %v570_v32 = vmul.f32 %v2426_v53, %v2669_v51  ;;  %v627_v37 = vmul.f32 %v2428_v54, %v2646_v58 }
  0x7e   : > { %v834_v27 = vadd.f32 %v2359_v16, %v779_v14  ;;  %v1167_v33 = vadd.f32 %v1125_v48, %v1074_v41  ;;  %v2771_v34 = vsel %vm351_vm0, 0.0, %v365_v24  ;;  %v2775_v35 = vsel %vm450_vm1, 0.0, %v464_v42  ;;  %v4022_v14 = vld [vmem:[#allocation26_spill] sm:$0xff] }
  0x7f   : > { %1708 = vst [vmem:[%s2458_s24 + $0x40] sm:$0xff] %v1576_v43  ;;  %v1535_v40 = vadd.f32 %v1493_v12, %v1442_v29  ;;  %v675_v44 = vadd.f32 %v627_v37, %v570_v32  ;;  %v732_v63 = vmul.f32 %v2430_v57, %v2673_v39  ;;  %v982_v7 = vmul.f32 %v2576_v31, %v2555_v49  ;;  %v4023_v12 = vld [vmem:[#allocation27_spill] sm:$0xff]  ;;  %v4024_v43 = vld [vmem:[#allocation28_spill] sm:$0xff] }
  0x80   : > { %v1209_v48 = vadd.f32 %v1167_v33, %v834_v27  ;;  %v1033_v30 = vmul.f32 %v2578_v38, %v2530_v56  ;;  %v1126_v2 = vmul.f32 %v2580_v55, %v2567_v19  ;;  %v1350_v41 = vmul.f32 %v4022_v14, %v2771_v34 }
  0x81   : > { %v780_v24 = vadd.f32 %v732_v63, %v675_v44  ;;  %v1401_v42 = vmul.f32 %v4023_v12, %v2750_v11  ;;  %v1494_v29 = vmul.f32 %v4024_v43, %v2775_v35  ;;  %v366_v33 = vrot.slane %v2778_v3, 7 }
  0x82   : > { %v1577_v49 = vadd.f32 %v1535_v40, %v1209_v48  ;;  %v1075_v27 = vadd.f32 %v1033_v30, %v982_v7  ;;  %v465_v56 = vrot.slane %v2778_v3, 1  ;;  %v571_v19 = vmul.f32 %v2484_v45, %v2705_v28  ;;  %v2816_v30 = vld [vmem:[%s2317_s12 + $0x78] sm:$0xff] }
  0x83   : > { %v835_v32 = vadd.f32 %v2420_v50, %v780_v24  ;;  %v1443_v37 = vadd.f32 %v1401_v42, %v1350_v41  ;;  %v2802_v44 = vsel %vm351_vm0, 0.0, %v366_v33  ;;  %v628_v63 = vmul.f32 %v2486_v46, %v2681_v61 }
  0x84   : > { %1709 = vst [vmem:[%s2458_s24 + $0x48] sm:$0xff] %v1577_v49  ;;  %v1168_v43 = vadd.f32 %v1126_v2, %v1075_v27  ;;  %v2809_v40 = vsel %vm450_vm1, 0.0, %v465_v56  ;;  %v733_v7 = vmul.f32 %v2491_v52, %v2709_v62  ;;  %v983_v48 = vmul.f32 %v2616_v13, %v2596_v26 }
  0x85   : > { %v1536_v41 = vadd.f32 %v1494_v29, %v1443_v37  ;;  %v676_v24 = vadd.f32 %v628_v63, %v571_v19  ;;  %v1034_v42 = vmul.f32 %v2618_v0, %v2570_v5  ;;  %v1127_v2 = vmul.f32 %v2620_v8, %v2600_v36 }
  0x86   : > { %v1210_v33 = vadd.f32 %v1168_v43, %v835_v32  ;;  %v1351_v49 = vmul.f32 %v2500_v4, %v2802_v44  ;;  %v1402_v27 = vmul.f32 %v2502_v6, %v2778_v3  ;;  %v1495_v26 = vmul.f32 %v2504_v10, %v2809_v40 }
  0x87   : > { %v781_v29 = vadd.f32 %v733_v7, %v676_v24  ;;  %v1076_v56 = vadd.f32 %v1034_v42, %v983_v48  ;;  %v367_v19 = vrot.slane %v2816_v30, 7  ;;  %v466_v5 = vrot.slane %v2816_v30, 1  ;;  %v2844_v48 = vld [vmem:[%s2317_s12 + $0x80] sm:$0xff] }
  0x88   : > { %v1578_v37 = vadd.f32 %v1536_v41, %v1210_v33  ;;  %v1444_v36 = vadd.f32 %v1402_v27, %v1351_v49  ;;  %v572_v43 = vmul.f32 %v2375_v21, %v2736_v17  ;;  %v629_v32 = vmul.f32 %v2377_v22, %v2712_v59  ;;  %v4026_v49 = vld [vmem:[#allocation35_spill] sm:$0xff] }
  0x89   : > { %v836_v63 = vadd.f32 %v2489_v47, %v781_v29  ;;  %v1169_v6 = vadd.f32 %v1127_v2, %v1076_v56  ;;  %v2837_v10 = vsel %vm351_vm0, 0.0, %v367_v19  ;;  %v2841_v7 = vsel %vm450_vm1, 0.0, %v466_v5  ;;  %v4027_v56 = vld [vmem:[#allocation21_spill] sm:$0xff] }
  0x8a   : > { %4025 = vst [vmem:[#allocation20_spill] sm:$0xff] %v2841_v7  ;;  %v1537_v41 = vadd.f32 %v1495_v26, %v1444_v36  ;;  %v677_v24 = vadd.f32 %v629_v32, %v572_v43  ;;  %v734_v42 = vmul.f32 %v2379_v23, %v2743_v60  ;;  %v984_v33 = vmul.f32 %v2537_v9, %v2635_v18  ;;  %v4028_v26 = vld [vmem:[#allocation22_spill] sm:$0xff]  ;;  %v4029_v36 = vld [vmem:[#allocation23_spill] sm:$0xff] }
  0x8b   : > { %1710 = vst [vmem:[%s2458_s24 + $0x50] sm:$0xff] %v1578_v37  ;;  %v1211_v2 = vadd.f32 %v1169_v6, %v836_v63  ;;  %v1035_v27 = vmul.f32 %v4020_v20, %v4026_v49  ;;  %v1128_v29 = vmul.f32 %v2541_v25, %v2639_v15  ;;  %v1352_v19 = vmul.f32 %v4027_v56, %v2837_v10 }
  0x8c   : > { %v782_v5 = vadd.f32 %v734_v42, %v677_v24  ;;  %v1403_v37 = vmul.f32 %v4028_v26, %v2816_v30  ;;  %v1496_v43 = vmul.f32 %v4029_v36, %v2841_v7  ;;  %v368_v6 = vrot.slane %v2844_v48, 7 }
  0x8d   : > { %v1579_v18 = vadd.f32 %v1537_v41, %v1211_v2  ;;  %v1077_v32 = vadd.f32 %v1035_v27, %v984_v33  ;;  %v467_v63 = vrot.slane %v2844_v48, 1  ;;  %v573_v15 = vmul.f32 %v2426_v53, %v2771_v34  ;;  %v2882_v27 = vld [vmem:[%s2317_s12 + $0x88] sm:$0xff] }
  0x8e   : > { %v837_v49 = vadd.f32 %v2359_v16, %v782_v5  ;;  %v1445_v56 = vadd.f32 %v1403_v37, %v1352_v19  ;;  %v2868_v24 = vsel %vm351_vm0, 0.0, %v368_v6  ;;  %v630_v42 = vmul.f32 %v2428_v54, %v2750_v11 }
  0x8f   : > { %1711 = vst [vmem:[%s2458_s24 + $0x58] sm:$0xff] %v1579_v18  ;;  %v1170_v36 = vadd.f32 %v1128_v29, %v1077_v32  ;;  %v2875_v41 = vsel %vm450_vm1, 0.0, %v467_v63  ;;  %v735_v33 = vmul.f32 %v2430_v57, %v2775_v35  ;;  %v985_v2 = vmul.f32 %v2576_v31, %v2669_v51  ;;  %v4030_v51 = vld [vmem:[#allocation28_spill] sm:$0xff] }
  0x90   : > { %v1538_v19 = vadd.f32 %v1496_v43, %v1445_v56  ;;  %v678_v5 = vadd.f32 %v630_v42, %v573_v15  ;;  %v1036_v37 = vmul.f32 %v2578_v38, %v2646_v58  ;;  %v1129_v29 = vmul.f32 %v2580_v55, %v2673_v39 }
  0x91   : > { %v1212_v6 = vadd.f32 %v1170_v36, %v837_v49  ;;  %v1353_v18 = vmul.f32 %v4022_v14, %v2868_v24  ;;  %v1404_v32 = vmul.f32 %v4023_v12, %v2844_v48  ;;  %v1497_v63 = vmul.f32 %v4030_v51, %v2875_v41 }
  0x92   : > { %v783_v56 = vadd.f32 %v735_v33, %v678_v5  ;;  %v1078_v43 = vadd.f32 %v1036_v37, %v985_v2  ;;  %v369_v15 = vrot.slane %v2882_v27, 7  ;;  %v468_v58 = vrot.slane %v2882_v27, 1  ;;  %v2910_v2 = vld [vmem:[%s2317_s12 + $0x90] sm:$0xff] }
  0x93   : > { %v1580_v42 = vadd.f32 %v1538_v19, %v1212_v6  ;;  %v1446_v39 = vadd.f32 %v1404_v32, %v1353_v18  ;;  %v574_v36 = vmul.f32 %v2484_v45, %v2802_v44  ;;  %v631_v49 = vmul.f32 %v2486_v46, %v2778_v3 }
  0x94   : > { %v838_v14 = vadd.f32 %v2420_v50, %v783_v56  ;;  %v1171_v12 = vadd.f32 %v1129_v29, %v1078_v43  ;;  %v2903_v51 = vsel %vm351_vm0, 0.0, %v369_v15  ;;  %v2907_v33 = vsel %vm450_vm1, 0.0, %v468_v58  ;;  %v4032_v58 = vld [vmem:[#allocation32_spill] sm:$0xff] }
  0x95   : > { %1712 = vst [vmem:[%s2458_s24 + $0x60] sm:$0xff] %v1580_v42  ;;  %v1539_v19 = vadd.f32 %v1497_v63, %v1446_v39  ;;  %v679_v5 = vadd.f32 %v631_v49, %v574_v36  ;;  %v736_v37 = vmul.f32 %v2491_v52, %v2809_v40  ;;  %v986_v6 = vmul.f32 %v2616_v13, %v2705_v28  ;;  %v4031_v63 = vld [vmem:[#allocation31_spill] sm:$0xff] }
  0x96   : > { %v1213_v29 = vadd.f32 %v1171_v12, %v838_v14  ;;  %v1037_v18 = vmul.f32 %v2618_v0, %v2681_v61  ;;  %v1130_v32 = vmul.f32 %v2620_v8, %v2709_v62  ;;  %v1354_v56 = vmul.f32 %v2500_v4, %v2903_v51 }
  0x97   : > { %v784_v43 = vadd.f32 %v736_v37, %v679_v5  ;;  %v1405_v15 = vmul.f32 %v4031_v63, %v2882_v27  ;;  %v1498_v42 = vmul.f32 %v4032_v58, %v2907_v33  ;;  %v370_v28 = vrot.slane %v2910_v2, 7 }
  0x98   : > { %v1581_v14 = vadd.f32 %v1539_v19, %v1213_v29  ;;  %v1079_v12 = vadd.f32 %v1037_v18, %v986_v6  ;;  %v469_v61 = vrot.slane %v2910_v2, 1  ;;  %v575_v62 = vmul.f32 %v2375_v21, %v2837_v10  ;;  %v2948_v18 = vld [vmem:[%s2317_s12 + $0x98] sm:$0xff] }
  0x99   : > { %v839_v39 = vadd.f32 %v2489_v47, %v784_v43  ;;  %v1447_v36 = vadd.f32 %v1405_v15, %v1354_v56  ;;  %v2934_v49 = vsel %vm351_vm0, 0.0, %v370_v28  ;;  %v632_v5 = vmul.f32 %v2377_v22, %v2816_v30 }
  0x9a   : > { %1713 = vst [vmem:[%s2458_s24 + $0x68] sm:$0xff] %v1581_v14  ;;  %v1172_v37 = vadd.f32 %v1130_v32, %v1079_v12  ;;  %v2941_v19 = vsel %vm450_vm1, 0.0, %v469_v61  ;;  %v737_v6 = vmul.f32 %v2379_v23, %v2841_v7  ;;  %v987_v29 = vmul.f32 %v2537_v9, %v2736_v17  ;;  %v4033_v14 = vld [vmem:[#allocation21_spill] sm:$0xff]  ;;  %v4034_v17 = vld [vmem:[#allocation23_spill] sm:$0xff] }
  0x9b   : > { %v1540_v56 = vadd.f32 %v1498_v42, %v1447_v36  ;;  %v680_v43 = vadd.f32 %v632_v5, %v575_v62  ;;  %v1038_v15 = vmul.f32 %v4020_v20, %v2712_v59  ;;  %v1131_v32 = vmul.f32 %v2541_v25, %v2743_v60 }
  0x9c   : > { %v1214_v28 = vadd.f32 %v1172_v37, %v839_v39  ;;  %v1355_v12 = vmul.f32 %v4033_v14, %v2934_v49  ;;  %v1406_v61 = vmul.f32 %v4028_v26, %v2910_v2  ;;  %v1499_v7 = vmul.f32 %v4034_v17, %v2941_v19 }
  0x9d   : > { %v785_v42 = vadd.f32 %v737_v6, %v680_v43  ;;  %v1080_v62 = vadd.f32 %v1038_v15, %v987_v29  ;;  %v371_v36 = vrot.slane %v2948_v18, 7  ;;  %v470_v59 = vrot.slane %v2948_v18, 1  ;;  %v2976_v29 = vld [vmem:[%s2317_s12 + $0xa0] sm:$0xff] }
  0x9e   : > { %v1582_v5 = vadd.f32 %v1540_v56, %v1214_v28  ;;  %v1448_v60 = vadd.f32 %v1406_v61, %v1355_v12  ;;  %v576_v39 = vmul.f32 %v2426_v53, %v2868_v24  ;;  %v633_v37 = vmul.f32 %v2428_v54, %v2844_v48 }
  0x9f   : > { %v840_v14 = vadd.f32 %v2359_v16, %v785_v42  ;;  %v1173_v26 = vadd.f32 %v1131_v32, %v1080_v62  ;;  %v2969_v17 = vsel %vm351_vm0, 0.0, %v371_v36  ;;  %v2973_v6 = vsel %vm450_vm1, 0.0, %v470_v59  ;;  %v4036_v42 = vld [vmem:[#allocation26_spill] sm:$0xff] }
  0xa0   : > { %4035 = vst [vmem:[#allocation24_spill] sm:$0xff] %v2973_v6  ;;  %v1541_v56 = vadd.f32 %v1499_v7, %v1448_v60  ;;  %v681_v43 = vadd.f32 %v633_v37, %v576_v39  ;;  %v738_v15 = vmul.f32 %v2430_v57, %v2875_v41  ;;  %v988_v28 = vmul.f32 %v2576_v31, %v2771_v34  ;;  %v4037_v7 = vld [vmem:[#allocation27_spill] sm:$0xff] }
  0xa1   : > { %1714 = vst [vmem:[%s2458_s24 + $0x70] sm:$0xff] %v1582_v5  ;;  %v1215_v32 = vadd.f32 %v1173_v26, %v840_v14  ;;  %v1039_v12 = vmul.f32 %v2578_v38, %v2750_v11  ;;  %v1132_v61 = vmul.f32 %v2580_v55, %v2775_v35  ;;  %v1356_v62 = vmul.f32 %v4036_v42, %v2969_v17  ;;  %v4038_v5 = vld [vmem:[#allocation28_spill] sm:$0xff] }
  0xa2   : > { %v786_v36 = vadd.f32 %v738_v15, %v681_v43  ;;  %v1407_v59 = vmul.f32 %v4037_v7, %v2948_v18  ;;  %v1500_v60 = vmul.f32 %v4038_v5, %v2973_v6  ;;  %v372_v34 = vrot.slane %v2976_v29, 7 }
  0xa3   : > { %v1583_v26 = vadd.f32 %v1541_v56, %v1215_v32  ;;  %v1081_v14 = vadd.f32 %v1039_v12, %v988_v28  ;;  %v471_v11 = vrot.slane %v2976_v29, 1  ;;  %v577_v35 = vmul.f32 %v2484_v45, %v2903_v51  ;;  %v3014_v12 = vld [vmem:[%s2317_s12 + $0xa8] sm:$0xff] }
  0xa4   : > { %v841_v39 = vadd.f32 %v2420_v50, %v786_v36  ;;  %v1449_v37 = vadd.f32 %v1407_v59, %v1356_v62  ;;  %v3000_v43 = vsel %vm351_vm0, 0.0, %v372_v34  ;;  %v634_v15 = vmul.f32 %v2486_v46, %v2882_v27 }
  0xa5   : > { %1715 = vst [vmem:[%s2458_s24 + $0x78] sm:$0xff] %v1583_v26  ;;  %v1174_v5 = vadd.f32 %v1132_v61, %v1081_v14  ;;  %v3007_v56 = vsel %vm450_vm1, 0.0, %v471_v11  ;;  %v739_v28 = vmul.f32 %v2491_v52, %v2907_v33  ;;  %v989_v32 = vmul.f32 %v2616_v13, %v2802_v44 }
  0xa6   : > { %v1542_v62 = vadd.f32 %v1500_v60, %v1449_v37  ;;  %v682_v36 = vadd.f32 %v634_v15, %v577_v35  ;;  %v1040_v59 = vmul.f32 %v2618_v0, %v2778_v3  ;;  %v1133_v61 = vmul.f32 %v2620_v8, %v2809_v40 }
  0xa7   : > { %v1216_v34 = vadd.f32 %v1174_v5, %v841_v39  ;;  %v1357_v26 = vmul.f32 %v2500_v4, %v3000_v43  ;;  %v1408_v14 = vmul.f32 %v4031_v63, %v2976_v29  ;;  %v1501_v44 = vmul.f32 %v4032_v58, %v3007_v56 }
  0xa8   : > { %v787_v60 = vadd.f32 %v739_v28, %v682_v36  ;;  %v1082_v11 = vadd.f32 %v1040_v59, %v989_v32  ;;  %v373_v35 = vrot.slane %v3014_v12, 7  ;;  %v472_v3 = vrot.slane %v3014_v12, 1  ;;  %v3040_v32 = vld [vmem:[%s2317_s12 + $0xb0] sm:$0xff] }
  0xa9   : > { %v1584_v37 = vadd.f32 %v1542_v62, %v1216_v34  ;;  %v1450_v40 = vadd.f32 %v1408_v14, %v1357_v26  ;;  %v578_v5 = vmul.f32 %v2375_v21, %v2934_v49  ;;  %v635_v39 = vmul.f32 %v2377_v22, %v2910_v2  ;;  %v4039_v14 = vld [vmem:[#allocation20_spill] sm:$0xff] }
  0xaa   : > { %v842_v15 = vadd.f32 %v2489_v47, %v787_v60  ;;  %v1175_v63 = vadd.f32 %v1133_v61, %v1082_v11  ;;  %v423_v58 = vsel %vm351_vm0, 0.0, %v373_v35  ;;  %v3037_v28 = vsel %vm450_vm1, 0.0, %v472_v3  ;;  %v4040_v11 = vld [vmem:[#allocation21_spill] sm:$0xff] }
  0xab   : > { %1716 = vst [vmem:[%s2458_s24 + $0x80] sm:$0xff] %v1584_v37  ;;  %v1543_v62 = vadd.f32 %v1501_v44, %v1450_v40  ;;  %v683_v36 = vadd.f32 %v635_v39, %v578_v5  ;;  %v740_v59 = vmul.f32 %v2379_v23, %v2941_v19  ;;  %v990_v34 = vmul.f32 %v2537_v9, %v2837_v10  ;;  %v4041_v44 = vld [vmem:[#allocation22_spill] sm:$0xff]  ;;  %v4042_v40 = vld [vmem:[#allocation23_spill] sm:$0xff] }
  0xac   : > { %v1217_v26 = vadd.f32 %v1175_v63, %v842_v15  ;;  %v1041_v61 = vmul.f32 %v4020_v20, %v2816_v30  ;;  %v1134_v60 = vmul.f32 %v2541_v25, %v4039_v14  ;;  %v1358_v35 = vmul.f32 %v4040_v11, %v423_v58 }
  0xad   : > { %v788_v3 = vadd.f32 %v740_v59, %v683_v36  ;;  %v1409_v37 = vmul.f32 %v4041_v44, %v3014_v12  ;;  %v1502_v5 = vmul.f32 %v4042_v40, %v3037_v28  ;;  %v374_v10 = vrot.slane %v3040_v32, 7 }
  0xae   : > { %v1585_v63 = vadd.f32 %v1543_v62, %v1217_v26  ;;  %v1083_v39 = vadd.f32 %v1041_v61, %v990_v34  ;;  %v473_v15 = vrot.slane %v3040_v32, 1  ;;  %v579_v30 = vmul.f32 %v2426_v53, %v2969_v17  ;;  %v317_v61 = vld [vmem:[%s2317_s12 + $0xb8] sm:$0xff] }
  0xaf   : > { %v843_v14 = vadd.f32 %v2359_v16, %v788_v3  ;;  %v1451_v11 = vadd.f32 %v1409_v37, %v1358_v35  ;;  %v424_v36 = vsel %vm351_vm0, 0.0, %v374_v10  ;;  %v636_v59 = vmul.f32 %v2428_v54, %v2948_v18 }
  0xb0   : > { %1717 = vst [vmem:[%s2458_s24 + $0x88] sm:$0xff] %v1585_v63  ;;  %v1176_v40 = vadd.f32 %v1134_v60, %v1083_v39  ;;  %v523_v62 = vsel %vm450_vm1, 0.0, %v473_v15  ;;  %v741_v34 = vmul.f32 %v2430_v57, %v2973_v6  ;;  %v991_v26 = vmul.f32 %v2576_v31, %v2868_v24  ;;  %v4043_v15 = vld [vmem:[#allocation28_spill] sm:$0xff] }
  0xb1   : > { %v1544_v3 = vadd.f32 %v1502_v5, %v1451_v11  ;;  %v684_v35 = vadd.f32 %v636_v59, %v579_v30  ;;  %v1042_v37 = vmul.f32 %v2578_v38, %v2844_v48  ;;  %v1135_v10 = vmul.f32 %v2580_v55, %v2875_v41 }
  0xb2   : > { %v1218_v63 = vadd.f32 %v1176_v40, %v843_v14  ;;  %v1359_v60 = vmul.f32 %v4036_v42, %v424_v36  ;;  %v1410_v39 = vmul.f32 %v4037_v7, %v3040_v32  ;;  %v1503_v44 = vmul.f32 %v4043_v15, %v523_v62 }
  0xb3   : > { %v789_v16 = vadd.f32 %v741_v34, %v684_v35  ;;  %v1084_v24 = vadd.f32 %v1042_v37, %v991_v26  ;;  %v375_v6 = vrot.slane %v317_v61, 7  ;;  %v474_v11 = vrot.slane %v317_v61, 1 }
  0xb4   : > { %v1586_v5 = vadd.f32 %v1544_v3, %v1218_v63  ;;  %v1452_v30 = vadd.f32 %v1410_v39, %v1359_v60  ;;  %v580_v48 = vmul.f32 %v2484_v45, %v3000_v43  ;;  %v637_v41 = vmul.f32 %v2486_v46, %v2976_v29  ;;  %v4044_v39 = vld [vmem:[#allocation31_spill] sm:$0xff] }
  0xb5   : > { %v844_v40 = vadd.f32 %v2420_v50, %v789_v16  ;;  %v1177_v14 = vadd.f32 %v1135_v10, %v1084_v24  ;;  %v425_v59 = vsel %vm351_vm0, 0.0, %v375_v6  ;;  %v524_v34 = vsel %vm450_vm1, 0.0, %v474_v11  ;;  %v4045_v24 = vld [vmem:[#allocation32_spill] sm:$0xff] }
  0xb6   : > { %1718 = vst [vmem:[%s2458_s24 + $0x90] sm:$0xff] %v1586_v5  ;;  %v1545_v26 = vadd.f32 %v1503_v44, %v1452_v30  ;;  %v685_v35 = vadd.f32 %v637_v41, %v580_v48  ;;  %v742_v3 = vmul.f32 %v2491_v52, %v3007_v56  ;;  %v992_v37 = vmul.f32 %v2616_v13, %v2903_v51 }
  0xb7   : > { %v1219_v63 = vadd.f32 %v1177_v14, %v844_v40  ;;  %v1043_v16 = vmul.f32 %v2618_v0, %v2882_v27  ;;  %v1136_v6 = vmul.f32 %v2620_v8, %v2907_v33  ;;  %v1360_v10 = vmul.f32 %v2500_v4, %v425_v59 }
  0xb8   : > { %v790_v60 = vadd.f32 %v742_v3, %v685_v35  ;;  %v1411_v44 = vmul.f32 %v4044_v39, %v317_v61  ;;  %v1504_v11 = vmul.f32 %v4045_v24, %v524_v34  ;;  %v581_v5 = vmul.f32 %v2375_v21, %v423_v58 }
  0xb9   : > { %v1587_v30 = vadd.f32 %v1545_v26, %v1219_v63  ;;  %v1085_v48 = vadd.f32 %v1043_v16, %v992_v37  ;;  %v638_v51 = vmul.f32 %v2377_v22, %v3014_v12  ;;  %v743_v27 = vmul.f32 %v2379_v23, %v3037_v28 }
  0xba   : > { %v845_v41 = vadd.f32 %v2489_v47, %v790_v60  ;;  %v1453_v33 = vadd.f32 %v1411_v44, %v1360_v10  ;;  %v993_v40 = vmul.f32 %v2537_v9, %v2934_v49  ;;  %v1044_v14 = vmul.f32 %v4020_v20, %v2910_v2  ;;  %v4046_v10 = vld [vmem:[#allocation24_spill] sm:$0xff] }
  0xbb   : > { %1719 = vst [vmem:[%s2458_s24 + $0x98] sm:$0xff] %v1587_v30  ;;  %v1178_v35 = vadd.f32 %v1136_v6, %v1085_v48  ;;  %v686_v58 = vadd.f32 %v638_v51, %v581_v5  ;;  %v1137_v26 = vmul.f32 %v2541_v25, %v2941_v19  ;;  %v582_v12 = vmul.f32 %v2426_v53, %v424_v36  ;;  %v3129_v48 = vld [vmem:[%s2317_s12 + $0xc0] sm:$0xff] }
  0xbc   : > { %v1546_v3 = vadd.f32 %v1504_v11, %v1453_v33  ;;  %v1086_v28 = vadd.f32 %v1044_v14, %v993_v40  ;;  %v639_v37 = vmul.f32 %v2428_v54, %v3040_v32  ;;  %v744_v49 = vmul.f32 %v2430_v57, %v523_v62  ;;  %v4047_v32 = vld [vmem:[#allocation19_spill] sm:$0xff] }
  0xbd   : > { %v1220_v63 = vadd.f32 %v1178_v35, %v845_v41  ;;  %v791_v16 = vadd.f32 %v743_v27, %v686_v58  ;;  %v994_v2 = vmul.f32 %v2576_v31, %v2969_v17  ;;  %v1045_v19 = vmul.f32 %v2578_v38, %v2948_v18  ;;  %v3132_v17 = vld [vmem:[%s2317_s12 + $0xd8] sm:$0xff] }
  0xbe   : > { %v1179_v6 = vadd.f32 %v1137_v26, %v1086_v28  ;;  %v687_v36 = vadd.f32 %v639_v37, %v582_v12  ;;  %v1138_v60 = vmul.f32 %v2580_v55, %v4046_v10  ;;  %v583_v44 = vmul.f32 %v2484_v45, %v425_v59  ;;  %v4048_v10 = vld [vmem:[#allocation21_spill] sm:$0xff] }
  0xbf   : > { %v1588_v11 = vadd.f32 %v1546_v3, %v1220_v63  ;;  %v846_v5 = vadd.f32 %v4047_v32, %v791_v16  ;;  %v1087_v62 = vadd.f32 %v1045_v19, %v994_v2  ;;  %v640_v30 = vmul.f32 %v2486_v46, %v317_v61  ;;  %v3162_v63 = vld [vmem:[%s2317_s12 + $0xe0] sm:$0xff] }
  0xc0   : > { %v792_v51 = vadd.f32 %v744_v49, %v687_v36  ;;  %v745_v18 = vmul.f32 %v2491_v52, %v524_v34  ;;  %v995_v27 = vmul.f32 %v2616_v13, %v3000_v43  ;;  %v1046_v59 = vmul.f32 %v2618_v0, %v2976_v29  ;;  %v3159_v49 = vld [vmem:[%s2317_s12 + $0xc8] sm:$0xff] }
  0xc1   : > { %1720 = vst [vmem:[%s2458_s24 + $0xa0] sm:$0xff] %v1588_v11  ;;  %v1221_v41 = vadd.f32 %v1179_v6, %v846_v5  ;;  %v1180_v33 = vadd.f32 %v1138_v60, %v1087_v62  ;;  %v688_v40 = vadd.f32 %v640_v30, %v583_v44  ;;  %v1139_v61 = vmul.f32 %v2620_v8, %v3007_v56  ;;  %v4049_v44 = vld [vmem:[#allocation22_spill] sm:$0xff]  ;;  %v4050_v5 = vld [vmem:[#allocation23_spill] sm:$0xff] }
  0xc2   : > { %v847_v14 = vadd.f32 %v2420_v50, %v792_v51  ;;  %v1088_v35 = vadd.f32 %v1046_v59, %v995_v27  ;;  %v376_v34 = vrot.slane %v3129_v48, 7  ;;  %v379_v58 = vrot.slane %v3132_v17, 7 }
  0xc3   : > { %1721 = vst [vmem:[%s2458_s24 + $0xa8] sm:$0xff] %v1221_v41  ;;  %v793_v43 = vadd.f32 %v745_v18, %v688_v40  ;;  %v475_v29 = vrot.slane %v3129_v48, 1  ;;  %v478_v26 = vrot.slane %v3132_v17, 1  ;;  %v641_v12 = vmul.f32 %v2377_v22, %v3129_v48 }
  0xc4   : > { %v1222_v3 = vadd.f32 %v1180_v33, %v847_v14  ;;  %v1181_v28 = vadd.f32 %v1139_v61, %v1088_v35  ;;  %v3152_v56 = vsel %vm351_vm0, 0.0, %v376_v34  ;;  %v3156_v37 = vsel %vm351_vm0, 0.0, %v379_v58  ;;  %v3202_v58 = vld [vmem:[%s2317_s12 + $0xd0] sm:$0xff] }
  0xc5   : > { %v848_v16 = vadd.f32 %v2489_v47, %v793_v43  ;;  %v3167_v2 = vsel %vm450_vm1, 0.0, %v475_v29  ;;  %v3171_v19 = vsel %vm450_vm1, 0.0, %v478_v26  ;;  %v584_v6 = vmul.f32 %v2375_v21, %v3152_v56  ;;  %v3205_v43 = vld [vmem:[%s2317_s12 + $0xe8] sm:$0xff] }
  0xc6   : > { %1722 = vst [vmem:[%s2458_s24 + $0xb0] sm:$0xff] %v1222_v3  ;;  %v746_v36 = vmul.f32 %v2379_v23, %v3167_v2  ;;  %v1361_v60 = vmul.f32 %v4048_v10, %v3156_v37  ;;  %v1412_v11 = vmul.f32 %v4049_v44, %v3132_v17  ;;  %v1505_v62 = vmul.f32 %v4050_v5, %v3171_v19 }
  0xc7   : > { %v1223_v30 = vadd.f32 %v1181_v28, %v848_v16  ;;  %v689_v51 = vadd.f32 %v641_v12, %v584_v6  ;;  %v377_v18 = vrot.slane %v3159_v49, 7  ;;  %v380_v27 = vrot.slane %v3162_v63, 7 }
  0xc8   : > { %v1454_v59 = vadd.f32 %v1412_v11, %v1361_v60  ;;  %v476_v41 = vrot.slane %v3159_v49, 1  ;;  %v479_v33 = vrot.slane %v3162_v63, 1  ;;  %v642_v40 = vmul.f32 %v2428_v54, %v3159_v49 }
  0xc9   : > { %1723 = vst [vmem:[%s2458_s24 + $0xb8] sm:$0xff] %v1223_v30  ;;  %v794_v61 = vadd.f32 %v746_v36, %v689_v51  ;;  %v3193_v14 = vsel %vm351_vm0, 0.0, %v377_v18  ;;  %v3197_v35 = vsel %vm351_vm0, 0.0, %v380_v27  ;;  %v1413_v34 = vmul.f32 %v4037_v7, %v3162_v63 }
  0xca   : > { %v1547_v29 = vadd.f32 %v1505_v62, %v1454_v59  ;;  %v3209_v26 = vsel %vm450_vm1, 0.0, %v476_v41  ;;  %v3213_v12 = vsel %vm450_vm1, 0.0, %v479_v33  ;;  %v585_v3 = vmul.f32 %v2426_v53, %v3193_v14 }
  0xcb   : > { %v849_v28 = vadd.f32 %v4047_v32, %v794_v61  ;;  %v747_v16 = vmul.f32 %v2430_v57, %v3209_v26  ;;  %v1362_v6 = vmul.f32 %v4036_v42, %v3197_v35  ;;  %v1506_v36 = vmul.f32 %v4043_v15, %v3213_v12 }
  0xcc   : > { %v690_v60 = vadd.f32 %v642_v40, %v585_v3  ;;  %v378_v11 = vrot.slane %v3202_v58, 7  ;;  %v381_v62 = vrot.slane %v3205_v43, 7  ;;  %v477_v30 = vrot.slane %v3202_v58, 1 }
  0xcd   : > { %v1589_v51 = vadd.f32 %v1547_v29, %v849_v28  ;;  %v1455_v18 = vadd.f32 %v1413_v34, %v1362_v6  ;;  %v480_v27 = vrot.slane %v3205_v43, 1  ;;  %v643_v59 = vmul.f32 %v2486_v46, %v3202_v58  ;;  %v3243_v29 = vld [vmem:[%s2317_s12 + $0xf0] sm:$0xff] }
  0xce   : > { %v795_v41 = vadd.f32 %v747_v16, %v690_v60  ;;  %v3232_v33 = vsel %vm351_vm0, 0.0, %v378_v11  ;;  %v3236_v40 = vsel %vm351_vm0, 0.0, %v381_v62  ;;  %v3240_v61 = vsel %vm450_vm1, 0.0, %v477_v30 }
  0xcf   : > { %1724 = vst [vmem:[%s2458_s24 + $0xc0] sm:$0xff] %v1589_v51  ;;  %v1548_v34 = vadd.f32 %v1506_v36, %v1455_v18  ;;  %v3248_v3 = vsel %vm450_vm1, 0.0, %v480_v27  ;;  %v586_v28 = vmul.f32 %v2484_v45, %v3232_v33  ;;  %v748_v16 = vmul.f32 %v2491_v52, %v3240_v61 }
  0xd0   : > { %4051 = vst [vmem:[#allocation25_spill] sm:$0xff] %v3248_v3  ;;  %v850_v6 = vadd.f32 %v2420_v50, %v795_v41  ;;  %v1363_v60 = vmul.f32 %v2500_v4, %v3236_v40  ;;  %v1414_v36 = vmul.f32 %v4044_v39, %v3205_v43  ;;  %v1507_v11 = vmul.f32 %v4045_v24, %v3248_v3 }
  0xd1   : > { %v691_v62 = vadd.f32 %v643_v59, %v586_v28  ;;  %v382_v30 = vrot.slane %v3243_v29, 7  ;;  %v481_v51 = vrot.slane %v3243_v29, 1  ;;  %v587_v18 = vmul.f32 %v2375_v21, %v3156_v37 }
  0xd2   : > { %v1590_v27 = vadd.f32 %v1548_v34, %v850_v6  ;;  %v1456_v41 = vadd.f32 %v1414_v36, %v1363_v60  ;;  %v644_v4 = vmul.f32 %v2377_v22, %v3132_v17  ;;  %v749_v8 = vmul.f32 %v2379_v23, %v3171_v19  ;;  %v3280_v34 = vld [vmem:[%s2317_s12 + $0xf8] sm:$0xff] }
  0xd3   : > { %v796_v39 = vadd.f32 %v748_v16, %v691_v62  ;;  %v3271_v24 = vsel %vm351_vm0, 0.0, %v382_v30  ;;  %v3275_v59 = vsel %vm450_vm1, 0.0, %v481_v51  ;;  %v996_v28 = vmul.f32 %v2537_v9, %v3152_v56 }
  0xd4   : > { %1725 = vst [vmem:[%s2458_s24 + $0xc8] sm:$0xff] %v1590_v27  ;;  %v1549_v6 = vadd.f32 %v1507_v11, %v1456_v41  ;;  %v692_v60 = vadd.f32 %v644_v4, %v587_v18  ;;  %v1047_v36 = vmul.f32 %v4020_v20, %v3129_v48  ;;  %v1140_v16 = vmul.f32 %v2541_v25, %v3167_v2 }
  0xd5   : > { %v851_v62 = vadd.f32 %v2489_v47, %v796_v39  ;;  %v1364_v30 = vmul.f32 %v4048_v10, %v3271_v24  ;;  %v1415_v56 = vmul.f32 %v4049_v44, %v3243_v29  ;;  %v1508_v11 = vmul.f32 %v4050_v5, %v3275_v59 }
  0xd6   : > { %v797_v4 = vadd.f32 %v749_v8, %v692_v60  ;;  %v1089_v51 = vadd.f32 %v1047_v36, %v996_v28  ;;  %v383_v48 = vrot.slane %v3280_v34, 7  ;;  %v482_v18 = vrot.slane %v3280_v34, 1  ;;  %v3310_v28 = vld [vmem:[%s2317_s12 + $0x100] sm:$0xff] }
  0xd7   : > { %v1591_v2 = vadd.f32 %v1549_v6, %v851_v62  ;;  %v1457_v27 = vadd.f32 %v1415_v56, %v1364_v30  ;;  %v588_v39 = vmul.f32 %v2426_v53, %v3197_v35  ;;  %v645_v41 = vmul.f32 %v2428_v54, %v3162_v63 }
  0xd8   : > { %v852_v10 = vadd.f32 %v4047_v32, %v797_v4  ;;  %v1182_v44 = vadd.f32 %v1140_v16, %v1089_v51  ;;  %v3303_v5 = vsel %vm351_vm0, 0.0, %v383_v48  ;;  %v3307_v8 = vsel %vm450_vm1, 0.0, %v482_v18 }
  0xd9   : > { %1726 = vst [vmem:[%s2458_s24 + $0xd0] sm:$0xff] %v1591_v2  ;;  %v1550_v6 = vadd.f32 %v1508_v11, %v1457_v27  ;;  %v693_v60 = vadd.f32 %v645_v41, %v588_v39  ;;  %v750_v36 = vmul.f32 %v2430_v57, %v3213_v12  ;;  %v997_v62 = vmul.f32 %v2576_v31, %v3193_v14 }
  0xda   : > { %v1224_v16 = vadd.f32 %v1182_v44, %v852_v10  ;;  %v1048_v30 = vmul.f32 %v2578_v38, %v3159_v49  ;;  %v1141_v56 = vmul.f32 %v2580_v55, %v3209_v26  ;;  %v1365_v4 = vmul.f32 %v4036_v42, %v3303_v5 }
  0xdb   : > { %v798_v51 = vadd.f32 %v750_v36, %v693_v60  ;;  %v1416_v11 = vmul.f32 %v4037_v7, %v3280_v34  ;;  %v1509_v48 = vmul.f32 %v4043_v15, %v3307_v8  ;;  %v384_v10 = vrot.slane %v3310_v28, 7 }
  0xdc   : > { %v1592_v44 = vadd.f32 %v1550_v6, %v1224_v16  ;;  %v1090_v14 = vadd.f32 %v1048_v30, %v997_v62  ;;  %v483_v49 = vrot.slane %v3310_v28, 1  ;;  %v589_v26 = vmul.f32 %v2484_v45, %v3236_v40  ;;  %v3348_v62 = vld [vmem:[%s2317_s12 + $0x108] sm:$0xff] }
  0xdd   : > { %v853_v18 = vadd.f32 %v2420_v50, %v798_v51  ;;  %v1458_v2 = vadd.f32 %v1416_v11, %v1365_v4  ;;  %v3334_v27 = vsel %vm351_vm0, 0.0, %v384_v10  ;;  %v646_v39 = vmul.f32 %v2486_v46, %v3205_v43  ;;  %v4052_v51 = vld [vmem:[#allocation36_spill] sm:$0xff]  ;;  %v4053_v10 = vld [vmem:[#allocation30_spill] sm:$0xff] }
  0xde   : > { %1727 = vst [vmem:[%s2458_s24 + $0xd8] sm:$0xff] %v1592_v44  ;;  %v1183_v41 = vadd.f32 %v1141_v56, %v1090_v14  ;;  %v3341_v6 = vsel %vm450_vm1, 0.0, %v483_v49  ;;  %v751_v60 = vmul.f32 %v2491_v52, %v3248_v3  ;;  %v998_v36 = vmul.f32 %v2616_v13, %v3232_v33  ;;  %v4054_v14 = vld [vmem:[#allocation31_spill] sm:$0xff]  ;;  %v4055_v33 = vld [vmem:[#allocation32_spill] sm:$0xff] }
  0xdf   : > { %v1551_v16 = vadd.f32 %v1509_v48, %v1458_v2  ;;  %v694_v30 = vadd.f32 %v646_v39, %v589_v26  ;;  %v1049_v4 = vmul.f32 %v2618_v0, %v3202_v58  ;;  %v1142_v56 = vmul.f32 %v4052_v51, %v3240_v61 }
  0xe0   : > { %v1225_v11 = vadd.f32 %v1183_v41, %v853_v18  ;;  %v1366_v44 = vmul.f32 %v4053_v10, %v3334_v27  ;;  %v1417_v49 = vmul.f32 %v4054_v14, %v3310_v28  ;;  %v1510_v3 = vmul.f32 %v4055_v33, %v3341_v6 }
  0xe1   : > { %v799_v48 = vadd.f32 %v751_v60, %v694_v30  ;;  %v1091_v26 = vadd.f32 %v1049_v4, %v998_v36  ;;  %v385_v2 = vrot.slane %v3348_v62, 7  ;;  %v484_v58 = vrot.slane %v3348_v62, 1  ;;  %v3376_v36 = vld [vmem:[%s2317_s12 + $0x110] sm:$0xff] }
  0xe2   : > { %v1593_v39 = vadd.f32 %v1551_v16, %v1225_v11  ;;  %v1459_v61 = vadd.f32 %v1417_v49, %v1366_v44  ;;  %v590_v18 = vmul.f32 %v2375_v21, %v3271_v24  ;;  %v647_v41 = vmul.f32 %v2377_v22, %v3243_v29 }
  0xe3   : > { %v854_v10 = vadd.f32 %v2489_v47, %v799_v48  ;;  %v1184_v14 = vadd.f32 %v1142_v56, %v1091_v26  ;;  %v3369_v33 = vsel %vm351_vm0, 0.0, %v385_v2  ;;  %v3373_v60 = vsel %vm450_vm1, 0.0, %v484_v58  ;;  %v4056_v48 = vld [vmem:[#allocation21_spill] sm:$0xff] }
  0xe4   : > { %1728 = vst [vmem:[%s2458_s24 + $0xe0] sm:$0xff] %v1593_v39  ;;  %v1552_v16 = vadd.f32 %v1510_v3, %v1459_v61  ;;  %v695_v30 = vadd.f32 %v647_v41, %v590_v18  ;;  %v752_v4 = vmul.f32 %v2379_v23, %v3275_v59  ;;  %v999_v11 = vmul.f32 %v2537_v9, %v3156_v37  ;;  %v4057_v3 = vld [vmem:[#allocation22_spill] sm:$0xff]  ;;  %v4058_v39 = vld [vmem:[#allocation23_spill] sm:$0xff] }
  0xe5   : > { %v1226_v56 = vadd.f32 %v1184_v14, %v854_v10  ;;  %v1050_v44 = vmul.f32 %v4020_v20, %v3132_v17  ;;  %v1143_v49 = vmul.f32 %v2541_v25, %v3171_v19  ;;  %v1367_v26 = vmul.f32 %v4056_v48, %v3369_v33 }
  0xe6   : > { %v800_v2 = vadd.f32 %v752_v4, %v695_v30  ;;  %v1418_v58 = vmul.f32 %v4057_v3, %v3348_v62  ;;  %v1511_v61 = vmul.f32 %v4058_v39, %v3373_v60  ;;  %v386_v37 = vrot.slane %v3376_v36, 7 }
  0xe7   : > { %v1594_v10 = vadd.f32 %v1552_v16, %v1226_v56  ;;  %v1092_v14 = vadd.f32 %v1050_v44, %v999_v11  ;;  %v485_v17 = vrot.slane %v3376_v36, 1  ;;  %v591_v19 = vmul.f32 %v2426_v53, %v3303_v5  ;;  %v3414_v44 = vld [vmem:[%s2317_s12 + $0x118] sm:$0xff] }
  0xe8   : > { %v855_v18 = vadd.f32 %v4047_v32, %v800_v2  ;;  %v1460_v41 = vadd.f32 %v1418_v58, %v1367_v26  ;;  %v3400_v30 = vsel %vm351_vm0, 0.0, %v386_v37  ;;  %v648_v4 = vmul.f32 %v2428_v54, %v3280_v34 }
  0xe9   : > { %1729 = vst [vmem:[%s2458_s24 + $0xe8] sm:$0xff] %v1594_v10  ;;  %v1185_v39 = vadd.f32 %v1143_v49, %v1092_v14  ;;  %v3407_v16 = vsel %vm450_vm1, 0.0, %v485_v17  ;;  %v753_v11 = vmul.f32 %v2430_v57, %v3307_v8  ;;  %v1000_v56 = vmul.f32 %v2576_v31, %v3197_v35 }
  0xea   : > { %v1553_v26 = vadd.f32 %v1511_v61, %v1460_v41  ;;  %v696_v2 = vadd.f32 %v648_v4, %v591_v19  ;;  %v1051_v58 = vmul.f32 %v2578_v38, %v3162_v63  ;;  %v1144_v49 = vmul.f32 %v2580_v55, %v3213_v12 }
  0xeb   : > { %v1227_v37 = vadd.f32 %v1185_v39, %v855_v18  ;;  %v1368_v10 = vmul.f32 %v4036_v42, %v3400_v30  ;;  %v1419_v14 = vmul.f32 %v4037_v7, %v3376_v36  ;;  %v1512_v35 = vmul.f32 %v4043_v15, %v3407_v16 }
  0xec   : > { %v801_v61 = vadd.f32 %v753_v11, %v696_v2  ;;  %v1093_v17 = vadd.f32 %v1051_v58, %v1000_v56  ;;  %v387_v19 = vrot.slane %v3414_v44, 7  ;;  %v486_v63 = vrot.slane %v3414_v44, 1  ;;  %v3442_v56 = vld [vmem:[%s2317_s12 + $0x120] sm:$0xff] }
  0xed   : > { %v1595_v41 = vadd.f32 %v1553_v26, %v1227_v37  ;;  %v1461_v12 = vadd.f32 %v1419_v14, %v1368_v10  ;;  %v592_v39 = vmul.f32 %v2484_v45, %v3334_v27  ;;  %v649_v18 = vmul.f32 %v2486_v46, %v3310_v28  ;;  %v4060_v14 = vld [vmem:[#allocation25_spill] sm:$0xff] }
  0xee   : > { %v856_v4 = vadd.f32 %v2420_v50, %v801_v61  ;;  %v1186_v7 = vadd.f32 %v1144_v49, %v1093_v17  ;;  %v3435_v15 = vsel %vm351_vm0, 0.0, %v387_v19  ;;  %v3439_v11 = vsel %vm450_vm1, 0.0, %v486_v63  ;;  %v4061_v17 = vld [vmem:[#allocation30_spill] sm:$0xff] }
  0xef   : > { %4059 = vst [vmem:[#allocation29_spill] sm:$0xff] %v3439_v11  ;;  %v1554_v26 = vadd.f32 %v1512_v35, %v1461_v12  ;;  %v697_v2 = vadd.f32 %v649_v18, %v592_v39  ;;  %v754_v58 = vmul.f32 %v2491_v52, %v3341_v6  ;;  %v1001_v37 = vmul.f32 %v2616_v13, %v3236_v40  ;;  %v4062_v35 = vld [vmem:[#allocation31_spill] sm:$0xff]  ;;  %v4063_v12 = vld [vmem:[#allocation32_spill] sm:$0xff] }
  0xf0   : > { %1730 = vst [vmem:[%s2458_s24 + $0xf0] sm:$0xff] %v1595_v41  ;;  %v1228_v49 = vadd.f32 %v1186_v7, %v856_v4  ;;  %v1052_v10 = vmul.f32 %v2618_v0, %v3205_v43  ;;  %v1145_v61 = vmul.f32 %v4052_v51, %v4060_v14  ;;  %v1369_v19 = vmul.f32 %v4061_v17, %v3435_v15 }
  0xf1   : > { %v802_v63 = vadd.f32 %v754_v58, %v697_v2  ;;  %v1420_v41 = vmul.f32 %v4062_v35, %v3414_v44  ;;  %v1513_v39 = vmul.f32 %v4063_v12, %v3439_v11  ;;  %v388_v7 = vrot.slane %v3442_v56, 7 }
  0xf2   : > { %v1596_v40 = vadd.f32 %v1554_v26, %v1228_v49  ;;  %v1094_v18 = vadd.f32 %v1052_v10, %v1001_v37  ;;  %v487_v43 = vrot.slane %v3442_v56, 1  ;;  %v593_v4 = vmul.f32 %v2375_v21, %v3369_v33  ;;  %v3480_v10 = vld [vmem:[%s2317_s12 + $0x128] sm:$0xff] }
  0xf3   : > { %v857_v14 = vadd.f32 %v2489_v47, %v802_v63  ;;  %v1462_v17 = vadd.f32 %v1420_v41, %v1369_v19  ;;  %v3466_v2 = vsel %vm351_vm0, 0.0, %v388_v7  ;;  %v650_v58 = vmul.f32 %v2377_v22, %v3348_v62 }
  0xf4   : > { %1731 = vst [vmem:[%s2458_s24 + $0xf8] sm:$0xff] %v1596_v40  ;;  %v1187_v12 = vadd.f32 %v1145_v61, %v1094_v18  ;;  %v3473_v26 = vsel %vm450_vm1, 0.0, %v487_v43  ;;  %v755_v37 = vmul.f32 %v2379_v23, %v3373_v60  ;;  %v1002_v49 = vmul.f32 %v2537_v9, %v3271_v24  ;;  %v4064_v24 = vld [vmem:[#allocation23_spill] sm:$0xff] }
  0xf5   : > { %v1555_v19 = vadd.f32 %v1513_v39, %v1462_v17  ;;  %v698_v63 = vadd.f32 %v650_v58, %v593_v4  ;;  %v1053_v41 = vmul.f32 %v4020_v20, %v3243_v29  ;;  %v1146_v61 = vmul.f32 %v2541_v25, %v3275_v59 }
  0xf6   : > { %v1229_v7 = vadd.f32 %v1187_v12, %v857_v14  ;;  %v1370_v40 = vmul.f32 %v4056_v48, %v3466_v2  ;;  %v1421_v18 = vmul.f32 %v4057_v3, %v3442_v56  ;;  %v1514_v43 = vmul.f32 %v4064_v24, %v3473_v26 }
  0xf7   : > { %v803_v17 = vadd.f32 %v755_v37, %v698_v63  ;;  %v1095_v39 = vadd.f32 %v1053_v41, %v1002_v49  ;;  %v389_v4 = vrot.slane %v3480_v10, 7  ;;  %v488_v29 = vrot.slane %v3480_v10, 1  ;;  %v3508_v49 = vld [vmem:[%s2317_s12 + $0x130] sm:$0xff] }
  0xf8   : > { %v1597_v58 = vadd.f32 %v1555_v19, %v1229_v7  ;;  %v1463_v59 = vadd.f32 %v1421_v18, %v1370_v40  ;;  %v594_v12 = vmul.f32 %v2426_v53, %v3400_v30  ;;  %v651_v14 = vmul.f32 %v2428_v54, %v3376_v36 }
  0xf9   : > { %v858_v48 = vadd.f32 %v4047_v32, %v803_v17  ;;  %v1188_v3 = vadd.f32 %v1146_v61, %v1095_v39  ;;  %v3501_v24 = vsel %vm351_vm0, 0.0, %v389_v4  ;;  %v3505_v37 = vsel %vm450_vm1, 0.0, %v488_v29  ;;  %v4066_v29 = vld [vmem:[#allocation28_spill] sm:$0xff] }
  0xfa   : > { %1732 = vst [vmem:[%s2458_s24 + $0x100] sm:$0xff] %v1597_v58  ;;  %v1556_v19 = vadd.f32 %v1514_v43, %v1463_v59  ;;  %v699_v63 = vadd.f32 %v651_v14, %v594_v12  ;;  %v756_v41 = vmul.f32 %v2430_v57, %v3407_v16  ;;  %v1003_v7 = vmul.f32 %v2576_v31, %v3303_v5  ;;  %v4065_v43 = vld [vmem:[#allocation27_spill] sm:$0xff] }
  0xfb   : > { %v1230_v61 = vadd.f32 %v1188_v3, %v858_v48  ;;  %v1054_v40 = vmul.f32 %v2578_v38, %v3280_v34  ;;  %v1147_v18 = vmul.f32 %v2580_v55, %v3307_v8  ;;  %v1371_v17 = vmul.f32 %v4036_v42, %v3501_v24 }
  0xfc   : > { %v804_v39 = vadd.f32 %v756_v41, %v699_v63  ;;  %v1422_v4 = vmul.f32 %v4065_v43, %v3480_v10  ;;  %v1515_v58 = vmul.f32 %v4066_v29, %v3505_v37  ;;  %v390_v5 = vrot.slane %v3508_v49, 7 }
  0xfd   : > { %v1598_v48 = vadd.f32 %v1556_v19, %v1230_v61  ;;  %v1096_v3 = vadd.f32 %v1054_v40, %v1003_v7  ;;  %v489_v34 = vrot.slane %v3508_v49, 1  ;;  %v595_v8 = vmul.f32 %v2484_v45, %v3435_v15  ;;  %v3546_v40 = vld [vmem:[%s2317_s12 + $0x138] sm:$0xff] }
  0xfe   : > { %v859_v59 = vadd.f32 %v2420_v50, %v804_v39  ;;  %v1464_v12 = vadd.f32 %v1422_v4, %v1371_v17  ;;  %v3532_v14 = vsel %vm351_vm0, 0.0, %v390_v5  ;;  %v652_v63 = vmul.f32 %v2486_v46, %v3414_v44 }
  0xff   : > { %1733 = vst [vmem:[%s2458_s24 + $0x108] sm:$0xff] %v1598_v48  ;;  %v1189_v41 = vadd.f32 %v1147_v18, %v1096_v3  ;;  %v3539_v19 = vsel %vm450_vm1, 0.0, %v489_v34  ;;  %v757_v7 = vmul.f32 %v2491_v52, %v3439_v11  ;;  %v1004_v61 = vmul.f32 %v2616_v13, %v3334_v27  ;;  %v4067_v48 = vld [vmem:[#allocation30_spill] sm:$0xff]  ;;  %v4068_v27 = vld [vmem:[#allocation32_spill] sm:$0xff] }
 0x100   : > { %v1557_v17 = vadd.f32 %v1515_v58, %v1464_v12  ;;  %v700_v39 = vadd.f32 %v652_v63, %v595_v8  ;;  %v1055_v4 = vmul.f32 %v2618_v0, %v3310_v28  ;;  %v1148_v18 = vmul.f32 %v4052_v51, %v3341_v6 }
 0x101   : > { %v1231_v5 = vadd.f32 %v1189_v41, %v859_v59  ;;  %v1372_v3 = vmul.f32 %v4067_v48, %v3532_v14  ;;  %v1423_v34 = vmul.f32 %v4062_v35, %v3508_v49  ;;  %v1516_v11 = vmul.f32 %v4068_v27, %v3539_v19 }
 0x102   : > { %v805_v58 = vadd.f32 %v757_v7, %v700_v39  ;;  %v1097_v8 = vadd.f32 %v1055_v4, %v1004_v61  ;;  %v391_v12 = vrot.slane %v3546_v40, 7  ;;  %v490_v28 = vrot.slane %v3546_v40, 1  ;;  %v3574_v61 = vld [vmem:[%s2317_s12 + $0x140] sm:$0xff] }
 0x103   : > { %v1599_v63 = vadd.f32 %v1557_v17, %v1231_v5  ;;  %v1465_v6 = vadd.f32 %v1423_v34, %v1372_v3  ;;  %v596_v59 = vmul.f32 %v2375_v21, %v3466_v2  ;;  %v653_v41 = vmul.f32 %v2377_v22, %v3442_v56 }
 0x104   : > { %v860_v48 = vadd.f32 %v2489_v47, %v805_v58  ;;  %v1190_v35 = vadd.f32 %v1148_v18, %v1097_v8  ;;  %v3567_v27 = vsel %vm351_vm0, 0.0, %v391_v12  ;;  %v3571_v7 = vsel %vm450_vm1, 0.0, %v490_v28  ;;  %v4069_v58 = vld [vmem:[#allocation21_spill] sm:$0xff] }
 0x105   : > { %1734 = vst [vmem:[%s2458_s24 + $0x110] sm:$0xff] %v1599_v63  ;;  %v1558_v17 = vadd.f32 %v1516_v11, %v1465_v6  ;;  %v701_v39 = vadd.f32 %v653_v41, %v596_v59  ;;  %v758_v4 = vmul.f32 %v2379_v23, %v3473_v26  ;;  %v1005_v5 = vmul.f32 %v2537_v9, %v3369_v33  ;;  %v4070_v11 = vld [vmem:[#allocation22_spill] sm:$0xff]  ;;  %v4071_v63 = vld [vmem:[#allocation23_spill] sm:$0xff] }
 0x106   : > { %v1232_v18 = vadd.f32 %v1190_v35, %v860_v48  ;;  %v1056_v3 = vmul.f32 %v4020_v20, %v3348_v62  ;;  %v1149_v34 = vmul.f32 %v2541_v25, %v3373_v60  ;;  %v1373_v8 = vmul.f32 %v4069_v58, %v3567_v27 }
 0x107   : > { %v806_v12 = vadd.f32 %v758_v4, %v701_v39  ;;  %v1424_v28 = vmul.f32 %v4070_v11, %v3546_v40  ;;  %v1517_v6 = vmul.f32 %v4071_v63, %v3571_v7  ;;  %v392_v33 = vrot.slane %v3574_v61, 7 }
 0x108   : > { %v1600_v35 = vadd.f32 %v1558_v17, %v1232_v18  ;;  %v1098_v48 = vadd.f32 %v1056_v3, %v1005_v5  ;;  %v491_v62 = vrot.slane %v3574_v61, 1  ;;  %v597_v60 = vmul.f32 %v2426_v53, %v3501_v24  ;;  %v3612_v3 = vld [vmem:[%s2317_s12 + $0x148] sm:$0xff] }
 0x109   : > { %v861_v59 = vadd.f32 %v4047_v32, %v806_v12  ;;  %v1466_v41 = vadd.f32 %v1424_v28, %v1373_v8  ;;  %v3598_v39 = vsel %vm351_vm0, 0.0, %v392_v33  ;;  %v654_v4 = vmul.f32 %v2428_v54, %v3480_v10 }
 0x10a   : > { %1735 = vst [vmem:[%s2458_s24 + $0x118] sm:$0xff] %v1600_v35  ;;  %v1191_v63 = vadd.f32 %v1149_v34, %v1098_v48  ;;  %v3605_v17 = vsel %vm450_vm1, 0.0, %v491_v62  ;;  %v759_v5 = vmul.f32 %v2430_v57, %v3505_v37  ;;  %v1006_v18 = vmul.f32 %v2576_v31, %v3400_v30 }
 0x10b   : > { %v1559_v8 = vadd.f32 %v1517_v6, %v1466_v41  ;;  %v702_v12 = vadd.f32 %v654_v4, %v597_v60  ;;  %v1057_v28 = vmul.f32 %v2578_v38, %v3376_v36  ;;  %v1150_v34 = vmul.f32 %v2580_v55, %v3407_v16 }
 0x10c   : > { %v1233_v33 = vadd.f32 %v1191_v63, %v861_v59  ;;  %v1374_v35 = vmul.f32 %v4036_v42, %v3598_v39  ;;  %v1425_v48 = vmul.f32 %v4065_v43, %v3574_v61  ;;  %v1518_v30 = vmul.f32 %v4066_v29, %v3605_v17 }
 0x10d   : > { %v807_v6 = vadd.f32 %v759_v5, %v702_v12  ;;  %v1099_v62 = vadd.f32 %v1057_v28, %v1006_v18  ;;  %v393_v60 = vrot.slane %v3612_v3, 7  ;;  %v492_v36 = vrot.slane %v3612_v3, 1  ;;  %v3640_v18 = vld [vmem:[%s2317_s12 + $0x150] sm:$0xff] }
 0x10e   : > { %v1601_v41 = vadd.f32 %v1559_v8, %v1233_v33  ;;  %v1467_v16 = vadd.f32 %v1425_v48, %v1374_v35  ;;  %v598_v63 = vmul.f32 %v2484_v45, %v3532_v14  ;;  %v655_v59 = vmul.f32 %v2486_v46, %v3508_v49  ;;  %v4073_v48 = vld [vmem:[#allocation29_spill] sm:$0xff] }
 0x10f   : > { %v862_v4 = vadd.f32 %v2420_v50, %v807_v6  ;;  %v1192_v43 = vadd.f32 %v1150_v34, %v1099_v62  ;;  %v3633_v29 = vsel %vm351_vm0, 0.0, %v393_v60  ;;  %v3637_v5 = vsel %vm450_vm1, 0.0, %v492_v36  ;;  %v4074_v62 = vld [vmem:[#allocation30_spill] sm:$0xff] }
 0x110   : > { %4072 = vst [vmem:[#allocation34_spill] sm:$0xff] %v3637_v5  ;;  %v1560_v8 = vadd.f32 %v1518_v30, %v1467_v16  ;;  %v703_v12 = vadd.f32 %v655_v59, %v598_v63  ;;  %v760_v28 = vmul.f32 %v2491_v52, %v3539_v19  ;;  %v1007_v33 = vmul.f32 %v2616_v13, %v3435_v15  ;;  %v4075_v30 = vld [vmem:[#allocation31_spill] sm:$0xff]  ;;  %v4076_v16 = vld [vmem:[#allocation32_spill] sm:$0xff] }
 0x111   : > { %1736 = vst [vmem:[%s2458_s24 + $0x120] sm:$0xff] %v1601_v41  ;;  %v1234_v34 = vadd.f32 %v1192_v43, %v862_v4  ;;  %v1058_v35 = vmul.f32 %v2618_v0, %v3414_v44  ;;  %v1151_v6 = vmul.f32 %v4052_v51, %v4073_v48  ;;  %v1375_v60 = vmul.f32 %v4074_v62, %v3633_v29 }
 0x112   : > { %v808_v36 = vadd.f32 %v760_v28, %v703_v12  ;;  %v1426_v41 = vmul.f32 %v4075_v30, %v3612_v3  ;;  %v1519_v63 = vmul.f32 %v4076_v16, %v3637_v5  ;;  %v394_v15 = vrot.slane %v3640_v18, 7 }
 0x113   : > { %v1602_v43 = vadd.f32 %v1560_v8, %v1234_v34  ;;  %v1100_v59 = vadd.f32 %v1058_v35, %v1007_v33  ;;  %v493_v44 = vrot.slane %v3640_v18, 1  ;;  %v599_v4 = vmul.f32 %v2375_v21, %v3567_v27  ;;  %v3678_v35 = vld [vmem:[%s2317_s12 + $0x158] sm:$0xff] }
 0x114   : > { %v863_v48 = vadd.f32 %v2489_v47, %v808_v36  ;;  %v1468_v62 = vadd.f32 %v1426_v41, %v1375_v60  ;;  %v3664_v12 = vsel %vm351_vm0, 0.0, %v394_v15  ;;  %v656_v28 = vmul.f32 %v2377_v22, %v3546_v40 }
 0x115   : > { %1737 = vst [vmem:[%s2458_s24 + $0x128] sm:$0xff] %v1602_v43  ;;  %v1193_v16 = vadd.f32 %v1151_v6, %v1100_v59  ;;  %v3671_v8 = vsel %vm450_vm1, 0.0, %v493_v44  ;;  %v761_v33 = vmul.f32 %v2379_v23, %v3571_v7  ;;  %v1008_v34 = vmul.f32 %v2537_v9, %v3466_v2  ;;  %v4077_v2 = vld [vmem:[#allocation23_spill] sm:$0xff] }
 0x116   : > { %v1561_v60 = vadd.f32 %v1519_v63, %v1468_v62  ;;  %v704_v36 = vadd.f32 %v656_v28, %v599_v4  ;;  %v1059_v41 = vmul.f32 %v4020_v20, %v3442_v56  ;;  %v1152_v6 = vmul.f32 %v2541_v25, %v3473_v26 }
 0x117   : > { %v1235_v15 = vadd.f32 %v1193_v16, %v863_v48  ;;  %v1376_v43 = vmul.f32 %v4069_v58, %v3664_v12  ;;  %v1427_v59 = vmul.f32 %v4070_v11, %v3640_v18  ;;  %v1520_v44 = vmul.f32 %v4077_v2, %v3671_v8 }
 0x118   : > { %v809_v62 = vadd.f32 %v761_v33, %v704_v36  ;;  %v1101_v63 = vadd.f32 %v1059_v41, %v1008_v34  ;;  %v395_v4 = vrot.slane %v3678_v35, 7  ;;  %v494_v56 = vrot.slane %v3678_v35, 1  ;;  %v3706_v34 = vld [vmem:[%s2317_s12 + $0x160] sm:$0xff] }
 0x119   : > { %v1603_v28 = vadd.f32 %v1561_v60, %v1235_v15  ;;  %v1469_v26 = vadd.f32 %v1427_v59, %v1376_v43  ;;  %v600_v16 = vmul.f32 %v2426_v53, %v3598_v39  ;;  %v657_v48 = vmul.f32 %v2428_v54, %v3574_v61 }
 0x11a   : > { %v864_v58 = vadd.f32 %v4047_v32, %v809_v62  ;;  %v1194_v11 = vadd.f32 %v1152_v6, %v1101_v63  ;;  %v3699_v2 = vsel %vm351_vm0, 0.0, %v395_v4  ;;  %v3703_v33 = vsel %vm450_vm1, 0.0, %v494_v56  ;;  %v4079_v56 = vld [vmem:[#allocation28_spill] sm:$0xff] }
 0x11b   : > { %1738 = vst [vmem:[%s2458_s24 + $0x130] sm:$0xff] %v1603_v28  ;;  %v1562_v60 = vadd.f32 %v1520_v44, %v1469_v26  ;;  %v705_v36 = vadd.f32 %v657_v48, %v600_v16  ;;  %v762_v41 = vmul.f32 %v2430_v57, %v3605_v17  ;;  %v1009_v15 = vmul.f32 %v2576_v31, %v3501_v24  ;;  %v4078_v44 = vld [vmem:[#allocation27_spill] sm:$0xff] }
 0x11c   : > { %v1236_v6 = vadd.f32 %v1194_v11, %v864_v58  ;;  %v1060_v43 = vmul.f32 %v2578_v38, %v3480_v10  ;;  %v1153_v59 = vmul.f32 %v2580_v55, %v3505_v37  ;;  %v1377_v62 = vmul.f32 %v4036_v42, %v3699_v2 }
 0x11d   : > { %v810_v63 = vadd.f32 %v762_v41, %v705_v36  ;;  %v1428_v4 = vmul.f32 %v4078_v44, %v3678_v35  ;;  %v1521_v28 = vmul.f32 %v4079_v56, %v3703_v33  ;;  %v396_v24 = vrot.slane %v3706_v34, 7 }
 0x11e   : > { %v1604_v58 = vadd.f32 %v1562_v60, %v1236_v6  ;;  %v1102_v11 = vadd.f32 %v1060_v43, %v1009_v15  ;;  %v495_v10 = vrot.slane %v3706_v34, 1  ;;  %v601_v37 = vmul.f32 %v2484_v45, %v3633_v29  ;;  %v3744_v43 = vld [vmem:[%s2317_s12 + $0x168] sm:$0xff] }
 0x11f   : > { %v865_v26 = vadd.f32 %v2420_v50, %v810_v63  ;;  %v1470_v16 = vadd.f32 %v1428_v4, %v1377_v62  ;;  %v3730_v48 = vsel %vm351_vm0, 0.0, %v396_v24  ;;  %v658_v36 = vmul.f32 %v2486_v46, %v3612_v3 }
 0x120   : > { %1739 = vst [vmem:[%s2458_s24 + $0x138] sm:$0xff] %v1604_v58  ;;  %v1195_v41 = vadd.f32 %v1153_v59, %v1102_v11  ;;  %v3737_v60 = vsel %vm450_vm1, 0.0, %v495_v10  ;;  %v763_v15 = vmul.f32 %v2491_v52, %v3637_v5  ;;  %v1010_v6 = vmul.f32 %v2616_v13, %v3532_v14  ;;  %v4080_v58 = vld [vmem:[#allocation30_spill] sm:$0xff]  ;;  %v4081_v14 = vld [vmem:[#allocation32_spill] sm:$0xff] }
 0x121   : > { %v1563_v62 = vadd.f32 %v1521_v28, %v1470_v16  ;;  %v706_v63 = vadd.f32 %v658_v36, %v601_v37  ;;  %v1061_v4 = vmul.f32 %v2618_v0, %v3508_v49  ;;  %v1154_v59 = vmul.f32 %v4052_v51, %v3539_v19 }
 0x122   : > { %v1237_v24 = vadd.f32 %v1195_v41, %v865_v26  ;;  %v1378_v11 = vmul.f32 %v4080_v58, %v3730_v48  ;;  %v1429_v10 = vmul.f32 %v4075_v30, %v3706_v34  ;;  %v1522_v5 = vmul.f32 %v4081_v14, %v3737_v60 }
 0x123   : > { %v811_v28 = vadd.f32 %v763_v15, %v706_v63  ;;  %v1103_v37 = vadd.f32 %v1061_v4, %v1010_v6  ;;  %v397_v16 = vrot.slane %v3744_v43, 7  ;;  %v496_v49 = vrot.slane %v3744_v43, 1  ;;  %v3770_v6 = vld [vmem:[%s2317_s12 + $0x170] sm:$0xff] }
 0x124   : > { %v1605_v36 = vadd.f32 %v1563_v62, %v1237_v24  ;;  %v1471_v19 = vadd.f32 %v1429_v10, %v1378_v11  ;;  %v602_v26 = vmul.f32 %v2375_v21, %v3664_v12  ;;  %v659_v41 = vmul.f32 %v2377_v22, %v3640_v18 }
 0x125   : > { %v866_v58 = vadd.f32 %v2489_v47, %v811_v28  ;;  %v1196_v30 = vadd.f32 %v1154_v59, %v1103_v37  ;;  %v447_v14 = vsel %vm351_vm0, 0.0, %v397_v16  ;;  %v3767_v15 = vsel %vm450_vm1, 0.0, %v496_v49  ;;  %v4082_v28 = vld [vmem:[#allocation21_spill] sm:$0xff] }
 0x126   : > { %1740 = vst [vmem:[%s2458_s24 + $0x140] sm:$0xff] %v1605_v36  ;;  %v1564_v62 = vadd.f32 %v1522_v5, %v1471_v19  ;;  %v707_v63 = vadd.f32 %v659_v41, %v602_v26  ;;  %v764_v4 = vmul.f32 %v2379_v23, %v3671_v8  ;;  %v1011_v24 = vmul.f32 %v2537_v9, %v3567_v27  ;;  %v4083_v5 = vld [vmem:[#allocation22_spill] sm:$0xff]  ;;  %v4084_v36 = vld [vmem:[#allocation23_spill] sm:$0xff] }
 0x127   : > { %v1238_v11 = vadd.f32 %v1196_v30, %v866_v58  ;;  %v1062_v59 = vmul.f32 %v4020_v20, %v3546_v40  ;;  %v1155_v10 = vmul.f32 %v2541_v25, %v3571_v7  ;;  %v1379_v37 = vmul.f32 %v4082_v28, %v447_v14 }
 0x128   : > { %v812_v16 = vadd.f32 %v764_v4, %v707_v63  ;;  %v1430_v49 = vmul.f32 %v4083_v5, %v3744_v43  ;;  %v1523_v19 = vmul.f32 %v4084_v36, %v3767_v15  ;;  %v398_v27 = vrot.slane %v3770_v6, 7 }
 0x129   : > { %v1606_v30 = vadd.f32 %v1564_v62, %v1238_v11  ;;  %v1104_v58 = vadd.f32 %v1062_v59, %v1011_v24  ;;  %v497_v26 = vrot.slane %v3770_v6, 1  ;;  %v603_v40 = vmul.f32 %v2426_v53, %v3699_v2  ;;  %v3803_v59 = vld [vmem:[%s2317_s12 + $0x178] sm:$0xff] }
 0x12a   : > { %v867_v7 = vadd.f32 %v4047_v32, %v812_v16  ;;  %v1472_v41 = vadd.f32 %v1430_v49, %v1379_v37  ;;  %v448_v63 = vsel %vm351_vm0, 0.0, %v398_v27  ;;  %v660_v4 = vmul.f32 %v2428_v54, %v3678_v35 }
 0x12b   : > { %1741 = vst [vmem:[%s2458_s24 + $0x148] sm:$0xff] %v1606_v30  ;;  %v1197_v28 = vadd.f32 %v1155_v10, %v1104_v58  ;;  %v547_v62 = vsel %vm450_vm1, 0.0, %v497_v26  ;;  %v765_v24 = vmul.f32 %v2430_v57, %v3703_v33  ;;  %v1012_v11 = vmul.f32 %v2576_v31, %v3598_v39 }
 0x12c   : > { %v1565_v37 = vadd.f32 %v1523_v19, %v1472_v41  ;;  %v708_v16 = vadd.f32 %v660_v4, %v603_v40  ;;  %v1063_v5 = vmul.f32 %v2578_v38, %v3574_v61  ;;  %v1156_v49 = vmul.f32 %v2580_v55, %v3605_v17 }
 0x12d   : > { %v1239_v10 = vadd.f32 %v1197_v28, %v867_v7  ;;  %v1380_v36 = vmul.f32 %v4036_v42, %v448_v63  ;;  %v1431_v27 = vmul.f32 %v4078_v44, %v3770_v6  ;;  %v1524_v30 = vmul.f32 %v4079_v56, %v547_v62 }
 0x12e   : > { %v813_v39 = vadd.f32 %v765_v24, %v708_v16  ;;  %v1105_v58 = vadd.f32 %v1063_v5, %v1012_v11  ;;  %v399_v19 = vrot.slane %v3803_v59, 7  ;;  %v498_v26 = vrot.slane %v3803_v59, 1  ;;  %v4085_v5 = vld [vmem:[#allocation34_spill] sm:$0xff] }
 0x12f   : > { %v1607_v40 = vadd.f32 %v1565_v37, %v1239_v10  ;;  %v1473_v61 = vadd.f32 %v1431_v27, %v1380_v36  ;;  %v604_v17 = vmul.f32 %v2484_v45, %v3730_v48  ;;  %v661_v7 = vmul.f32 %v2486_v46, %v3706_v34  ;;  %v4086_v10 = vld [vmem:[#allocation30_spill] sm:$0xff]  ;;  %v4087_v27 = vld [vmem:[#allocation31_spill] sm:$0xff] }
 0x130   : > { %v868_v42 = vadd.f32 %v2420_v50, %v813_v39  ;;  %v1198_v41 = vadd.f32 %v1156_v49, %v1105_v58  ;;  %v449_v44 = vsel %vm351_vm0, 0.0, %v399_v19  ;;  %v548_v56 = vsel %vm450_vm1, 0.0, %v498_v26  ;;  %v4088_v39 = vld [vmem:[#allocation32_spill] sm:$0xff] }
 0x131   : > { %1742 = vst [vmem:[%s2458_s24 + $0x150] sm:$0xff] %v1607_v40  ;;  %v1566_v4 = vadd.f32 %v1524_v30, %v1473_v61  ;;  %v709_v28 = vadd.f32 %v661_v7, %v604_v17  ;;  %v766_v24 = vmul.f32 %v2491_v52, %v3737_v60  ;;  %v1013_v11 = vmul.f32 %v2616_v13, %v3633_v29 }
 0x132   : > { %v1240_v37 = vadd.f32 %v1198_v41, %v868_v42  ;;  %v1064_v16 = vmul.f32 %v2618_v0, %v3612_v3  ;;  %v1157_v49 = vmul.f32 %v4052_v51, %v4085_v5  ;;  %v1381_v1 = vmul.f32 %v4086_v10, %v449_v44 }
 0x133   : > { %v814_v36 = vadd.f32 %v766_v24, %v709_v28  ;;  %v1432_v30 = vmul.f32 %v4087_v27, %v3803_v59  ;;  %v1525_v58 = vmul.f32 %v4088_v39, %v548_v56  ;;  %v605_v19 = vmul.f32 %v2375_v21, %v447_v14 }
 0x134   : > { %v1608_v26 = vadd.f32 %v1566_v4, %v1240_v37  ;;  %v1106_v29 = vadd.f32 %v1064_v16, %v1013_v11  ;;  %v662_v40 = vmul.f32 %v2377_v22, %v3744_v43  ;;  %v767_v3 = vmul.f32 %v2379_v23, %v3767_v15 }
 0x135   : > { %v869_v61 = vadd.f32 %v2489_v47, %v814_v36  ;;  %v1474_v17 = vadd.f32 %v1432_v30, %v1381_v1  ;;  %v1014_v7 = vmul.f32 %v2537_v9, %v3664_v12  ;;  %v1065_v42 = vmul.f32 %v4020_v20, %v3640_v18 }
 0x136   : > { %1743 = vst [vmem:[%s2458_s24 + $0x158] sm:$0xff] %v1608_v26  ;;  %v1199_v21 = vadd.f32 %v1157_v49, %v1106_v29  ;;  %v710_v14 = vadd.f32 %v662_v40, %v605_v19  ;;  %v1158_v41 = vmul.f32 %v2541_v25, %v3671_v8  ;;  %v606_v22 = vmul.f32 %v2426_v53, %v448_v63 }
 0x137   : > { %v1567_v43 = vadd.f32 %v1525_v58, %v1474_v17  ;;  %v1107_v4 = vadd.f32 %v1065_v42, %v1014_v7  ;;  %v663_v23 = vmul.f32 %v2428_v54, %v3770_v6  ;;  %v768_v15 = vmul.f32 %v2430_v57, %v547_v62 }
 0x138   : > { %v1241_v9 = vadd.f32 %v1199_v21, %v869_v61  ;;  %v815_v12 = vadd.f32 %v767_v3, %v710_v14  ;;  %v1015_v20 = vmul.f32 %v2576_v31, %v3699_v2  ;;  %v1066_v18 = vmul.f32 %v2578_v38, %v3678_v35 }
 0x139   : > { %v1200_v25 = vadd.f32 %v1158_v41, %v1107_v4  ;;  %v711_v8 = vadd.f32 %v663_v23, %v606_v22  ;;  %v1159_v53 = vmul.f32 %v2580_v55, %v3703_v33  ;;  %v607_v63 = vmul.f32 %v2484_v45, %v449_v44 }
 0x13a   : > { %v1609_v54 = vadd.f32 %v1567_v43, %v1241_v9  ;;  %v870_v57 = vadd.f32 %v4047_v32, %v815_v12  ;;  %v1108_v6 = vadd.f32 %v1066_v18, %v1015_v20  ;;  %v664_v62 = vmul.f32 %v2486_v46, %v3803_v59 }
 0x13b   : > { %v816_v31 = vadd.f32 %v768_v15, %v711_v8  ;;  %v769_v2 = vmul.f32 %v2491_v52, %v548_v56  ;;  %v1016_v38 = vmul.f32 %v2616_v13, %v3730_v48  ;;  %v1067_v55 = vmul.f32 %v2618_v0, %v3706_v34 }
 0x13c   : > { %1744 = vst [vmem:[%s2458_s24 + $0x160] sm:$0xff] %v1609_v54  ;;  %v1242_v45 = vadd.f32 %v1200_v25, %v870_v57  ;;  %v1201_v32 = vadd.f32 %v1159_v53, %v1108_v6  ;;  %v712_v35 = vadd.f32 %v664_v62, %v607_v63  ;;  %v1160_v46 = vmul.f32 %v4052_v51, %v3737_v60 }
 0x13d   : > { %v871_v52 = vadd.f32 %v2420_v50, %v816_v31  ;;  %v1109_v13 = vadd.f32 %v1067_v55, %v1016_v38 }
 0x13e   : > { %1745 = vst [vmem:[%s2458_s24 + $0x168] sm:$0xff] %v1242_v45  ;;  %v817_v0 = vadd.f32 %v769_v2, %v712_v35 }
 0x13f   : > { %v1243_v33 = vadd.f32 %v1201_v32, %v871_v52  ;;  %v1202_v34 = vadd.f32 %v1160_v46, %v1109_v13 }
 0x140   : > { %v872_v48 = vadd.f32 %v2489_v47, %v817_v0 }
 0x141   : > { %1746 = vst [vmem:[%s2458_s24 + $0x170] sm:$0xff] %v1243_v33 }
 0x142   : > { %v1244_v59 = vadd.f32 %v1202_v34, %v872_v48 }
 0x144   : > { %1747 = vst [vmem:[%s2458_s24 + $0x178] sm:$0xff] %v1244_v59 }
 0x145   : > { %2113 = shalt.err (!%p2110_p13)
}
 0x146   : > { %s2179_s28 = smov 384   ;;  %s2180_s1 = smov 768  }
 0x147   : > { %s2181_s14 = smov 24  }
 0x148   : > { %1922 = dma.vmem_to_hbm [thread:$0]  (%p2257_p9), %s1765_s5, 6144, %s1767_s8, %s1749_s9, %s2179_s28, %s2180_s1, %s2181_s14  }
 0x149 PF: > { %s4089_s12 = sld [smem:[#allocation13_spill]]  ;;  %p1935_p0 = pnand %p1900_p12, %p2264_p11 }
 0x14a   : > { %s4091_s20 = sld [smem:[#allocation15_spill]] }
 0x14b   : > { %p1936_p1 = pneg %p1935_p0 }
 0x14f   : > { %s1781_s26 = sand.u32 1, %s4089_s12  }
 0x150   : > { %s1782_s27 = scalar_lea.sflag [#allocation5], %s1781_s26 }
 0x151   : > { %2147 = dma.done.wait (%p1936_p1), %s1782_s27, 6144  }
 0x152   : > { %2149 = vsyncadd (%p1936_p1), %s1782_s27, 4294961152  ;;  %s22_s17 = sadd.s32 1, %s4091_s20   ;;  %s4092_s30 = sld [smem:[#allocation14_spill]] }
 0x153   : > { %p19_p2 = scmp.ge.s32.totalorder %s22_s17, 4   ;;  %s4093_s14 = sld [smem:[#allocation17_spill]] }
 0x154   : > { %s4094_s25 = sld [smem:[#allocation16_spill]]  ;;  %s4095_s12 = smov %s2156_s13 }
 0x155   : > { %s4097_s15 = smov %s2168_s16 }
 0x156   :  { %21 = sbr.rel (!%p19_p2) target bundleno = 10 (0xa), region = 102 }
 0x158   : > { %s4096_s13 = smov %s4092_s30 }
 0x15a   : > { %s4098_s16 = smov %s4094_s25 }
 0x15b   :  { %1788 = vsyncpa [#allocation4], 1 }
 0x15c   :  { %1790 = vsyncpa [#allocation4 + $0x1], 1 }
 0x15d   :  { %1791 = vsyncpa [#allocation7], 1 }
 0x15e   :  { %1793 = vsyncpa [#allocation7 + $0x1], 1 }
 0x15f   :  { %1794 = vsyncpa [#allocation5], 1 }
 0x160   :  { %1796 = vsyncpa [#allocation5 + $0x1], 1 }

</bundles_post_ra>
